<compile_context>
chip_gen: v7x
topology: tpu7x:2x2x1
jax: 0.10.0
libtpu: 0.0.40
codegen_flags: <defaults>
</compile_context>

<pallas_src>
import functools
import numpy as np
import jax
import jax.numpy as jnp
from jax.experimental import pallas as pl
from jax.experimental.pallas import tpu as pltpu


def _critic_rnn_kernel(x_ref, w1t_ref, b1_ref,
                       wih_r_ref, wih_z_ref, wih_n_ref,
                       br_ref, bz_ref, bin_ref,
                       whh_r_ref, whh_z_ref, whh_n_ref, bhn_ref,
                       w2t_ref, b2_ref,
                       out_ref, h_all_ref, *, T, B, H, use_tanh):
    """Whole sequence in one kernel invocation (time-major rows: row = t*B + b)."""
    x = x_ref[...]                                            # (T*B, Din)

    # ---- fc1 + activation: one batched MXU matmul over all T*B rows ----
    a = jnp.dot(x, w1t_ref[...], preferred_element_type=jnp.float32) + b1_ref[...]
    a = jnp.tanh(a) if use_tanh else jnp.maximum(a, 0.0)      # (T*B, H)

    # ---- input-side GRU projections, hoisted out of the recurrence ----
    # (r, z) biases already fold b_ih + b_hh; n keeps b_hh_n inside r*(.) below.
    gi_r = jnp.dot(a, wih_r_ref[...], preferred_element_type=jnp.float32) + br_ref[...]
    gi_z = jnp.dot(a, wih_z_ref[...], preferred_element_type=jnp.float32) + bz_ref[...]
    gi_n = jnp.dot(a, wih_n_ref[...], preferred_element_type=jnp.float32) + bin_ref[...]

    whh_r = whh_r_ref[...]
    whh_z = whh_z_ref[...]
    whh_n = whh_n_ref[...]
    bhn = bhn_ref[...]

    # ---- serial GRU recurrence (PyTorch gate order r, z, n; h0 = 0) ----
    h = jnp.zeros((B, H), jnp.float32)
    for t in range(T):                                        # T static -> full unroll
        lo = t * B                                            # static offset
        r = jax.nn.sigmoid(
            gi_r[lo:lo + B, :]
            + jnp.dot(h, whh_r, preferred_element_type=jnp.float32))
        z = jax.nn.sigmoid(
            gi_z[lo:lo + B, :]
            + jnp.dot(h, whh_z, preferred_element_type=jnp.float32))
        n = jnp.tanh(
            gi_n[lo:lo + B, :]
            + r * (jnp.dot(h, whh_n, preferred_element_type=jnp.float32) + bhn))
        h = (1.0 - z) * n + z * h                             # stays f32
        h_all_ref[lo:lo + B, :] = h                           # stage hidden state (static)

    # ---- fc2 batched over all timesteps: one MXU matmul, one store ----
    out_ref[...] = (jnp.dot(h_all_ref[...], w2t_ref[...],
                            preferred_element_type=jnp.float32) + b2_ref[...])


def critic_rnn_forward(s, params, *, use_tanh=True):
    """s: (B, T, state_dim+1) float32 -> value: (B, T, 1) float32."""
    B, T, Din = s.shape
    H = params["w_hh"].shape[1]

    # Time-major flattened rows (row = t*B + b), prepared once in XLA.
    x2d = jnp.transpose(s, (1, 0, 2)).reshape(T * B, Din).astype(jnp.float32)

    # fc1
    w1t = params["w1"].T                                      # (Din, H)
    b1 = params["b1"].reshape(1, H)

    # GRU weights pre-split per gate (PyTorch stacking order: r, z, n),
    # pre-transposed so the kernel does plain row-major x @ W^T.
    w_ih, w_hh = params["w_ih"], params["w_hh"]
    b_ih, b_hh = params["b_ih"], params["b_hh"]
    wih_r_t = w_ih[0:H].T                                     # (H, H)
    wih_z_t = w_ih[H:2 * H].T
    wih_n_t = w_ih[2 * H:].T
    whh_r_t = w_hh[0:H].T
    whh_z_t = w_hh[H:2 * H].T
    whh_n_t = w_hh[2 * H:].T
    br = (b_ih[0:H] + b_hh[0:H]).reshape(1, H)                # folded, loop-invariant
    bz = (b_ih[H:2 * H] + b_hh[H:2 * H]).reshape(1, H)
    bin_ = b_ih[2 * H:].reshape(1, H)
    bhn = b_hh[2 * H:].reshape(1, H)                          # stays inside r*(.)

    # fc2
    w2t = params["w2"].reshape(1, H).T                        # (H, 1)
    b2 = params["b2"].reshape(1, 1)

    vmem = pl.BlockSpec(memory_space=pltpu.MemorySpace.VMEM)

    out2d = pl.pallas_call(
        functools.partial(_critic_rnn_kernel, T=T, B=B, H=H, use_tanh=use_tanh),
        out_shape=jax.ShapeDtypeStruct((T * B, 1), jnp.float32),
        in_specs=[vmem] * 15,                                 # whole arrays, loaded once
        out_specs=vmem,
        scratch_shapes=[pltpu.VMEM((T * B, H), jnp.float32)], # staged hidden states
    )(x2d, w1t, b1,
      wih_r_t, wih_z_t, wih_n_t, br, bz, bin_,
      whh_r_t, whh_z_t, whh_n_t, bhn,
      w2t, b2)

    # (T*B, 1) time-major -> (B, T, 1)
    return jnp.transpose(out2d.reshape(T, B, 1), (1, 0, 2))


def init_params(key, state_dim, hidden_dim):
    """Deterministic params mimicking orthogonal_init_RNN (gain=sqrt(2), zero bias)."""
    ortho = jax.nn.initializers.orthogonal(scale=float(np.sqrt(2)))
    k1, k2, k3, k4 = jax.random.split(key, 4)
    Din = state_dim + 1
    H = hidden_dim
    return {
        "w1": ortho(k1, (H, Din), jnp.float32),        # critic_fc1.weight
        "b1": jnp.zeros((H,), jnp.float32),
        "w_ih": ortho(k2, (3 * H, H), jnp.float32),    # critic_rnn.weight_ih_l0
        "w_hh": ortho(k3, (3 * H, H), jnp.float32),    # critic_rnn.weight_hh_l0
        "b_ih": jnp.zeros((3 * H,), jnp.float32),
        "b_hh": jnp.zeros((3 * H,), jnp.float32),
        "w2": ortho(k4, (1, H), jnp.float32),          # critic_fc2.weight
        "b2": jnp.zeros((1,), jnp.float32),
    }


def ref_forward(s, p, *, use_tanh=True):
    """Pure-JAX reference replicating torch: fc1 -> act -> GRU(batch_first) -> fc2."""
    a = s @ p["w1"].T + p["b1"]
    a = jnp.tanh(a) if use_tanh else jnp.maximum(a, 0.0)
    a_tm = jnp.transpose(a, (1, 0, 2))               # (T, B, H)
    H = p["w_hh"].shape[1]
    h0 = jnp.zeros((s.shape[0], H), jnp.float32)

    def step(h, xt):
        gi = xt @ p["w_ih"].T + p["b_ih"]
        gh = h @ p["w_hh"].T + p["b_hh"]
        r = jax.nn.sigmoid(gi[:, :H] + gh[:, :H])
        z = jax.nn.sigmoid(gi[:, H:2 * H] + gh[:, H:2 * H])
        n = jnp.tanh(gi[:, 2 * H:] + r * gh[:, 2 * H:])
        h_new = (1.0 - z) * n + z * h
        return h_new, h_new

    _, hs = jax.lax.scan(step, h0, a_tm)             # (T, B, H)
    out = jnp.transpose(hs, (1, 0, 2))               # (B, T, H)
    return out @ p["w2"].T + p["b2"]


if __name__ == "__main__":
    B, T, STATE_DIM, HIDDEN = 4, 8, 11, 32           # small, forward-consistent shapes
    key = jax.random.PRNGKey(0)
    k_s, k_p = jax.random.split(key)

    s = jax.random.normal(k_s, (B, T, STATE_DIM + 1), dtype=jnp.float32)
    params = init_params(k_p, STATE_DIM, HIDDEN)

    fwd = jax.jit(functools.partial(critic_rnn_forward, use_tanh=True))
    value = jax.block_until_ready(fwd(s, params))

    ref = jax.block_until_ready(ref_forward(s, params, use_tanh=True))
    np.testing.assert_allclose(np.asarray(value), np.asarray(ref), rtol=1e-4, atol=1e-4)

    assert value.shape == (B, T, 1)
    print("KERNEL_OK")
</pallas_src>

<mosaic_0001>
module attributes {stable_mosaic.version = 11 : i64} {
  func.func @_critic_rnn_kernel(%arg0: memref<32x12xf32, #tpu.memory_space<vmem>>, %arg1: memref<12x32xf32, #tpu.memory_space<vmem>>, %arg2: memref<1x32xf32, #tpu.memory_space<vmem>>, %arg3: memref<32x32xf32, #tpu.memory_space<vmem>>, %arg4: memref<32x32xf32, #tpu.memory_space<vmem>>, %arg5: memref<32x32xf32, #tpu.memory_space<vmem>>, %arg6: memref<1x32xf32, #tpu.memory_space<vmem>>, %arg7: memref<1x32xf32, #tpu.memory_space<vmem>>, %arg8: memref<1x32xf32, #tpu.memory_space<vmem>>, %arg9: memref<32x32xf32, #tpu.memory_space<vmem>>, %arg10: memref<32x32xf32, #tpu.memory_space<vmem>>, %arg11: memref<32x32xf32, #tpu.memory_space<vmem>>, %arg12: memref<1x32xf32, #tpu.memory_space<vmem>>, %arg13: memref<32x1xf32, #tpu.memory_space<vmem>>, %arg14: memref<1x1xf32, #tpu.memory_space<vmem>>, %arg15: memref<32x1xf32, #tpu.memory_space<vmem>>, %arg16: memref<32x32xf32, #tpu.memory_space<vmem>>) attributes {dimension_semantics = [], scalar_prefetch = 0 : i64, scratch_operands = 1 : i64, tpu.core_type = #tpu.core_type<tc>} {
    %c0 = arith.constant 0 : index
    %c0_0 = arith.constant 0 : index
    %0 = vector.load %arg0[%c0, %c0_0] : memref<32x12xf32, #tpu.memory_space<vmem>>, vector<32x12xf32>
    %c0_1 = arith.constant 0 : index
    %c0_2 = arith.constant 0 : index
    %1 = vector.load %arg1[%c0_1, %c0_2] : memref<12x32xf32, #tpu.memory_space<vmem>>, vector<12x32xf32>
    %cst = arith.constant dense<0.000000e+00> : vector<32x32xf32>
    %2 = tpu.matmul %0, %1, %cst {dimension_numbers = #tpu.dot_dimension_numbers<[1], [0], [0], [1], [0, 0, 1, 1], [], []>} : vector<32x12xf32>, vector<12x32xf32>, vector<32x32xf32> -> vector<32x32xf32>
    %c0_3 = arith.constant 0 : index
    %c0_4 = arith.constant 0 : index
    %3 = vector.load %arg2[%c0_3, %c0_4] : memref<1x32xf32, #tpu.memory_space<vmem>>, vector<1x32xf32>
    %4 = vector.broadcast %3 : vector<1x32xf32> to vector<32x32xf32>
    %5 = arith.addf %2, %4 : vector<32x32xf32>
    %6 = math.tanh %5 : vector<32x32xf32>
    %c0_5 = arith.constant 0 : index
    %c0_6 = arith.constant 0 : index
    %7 = vector.load %arg3[%c0_5, %c0_6] : memref<32x32xf32, #tpu.memory_space<vmem>>, vector<32x32xf32>
    %cst_7 = arith.constant dense<0.000000e+00> : vector<32x32xf32>
    %8 = tpu.matmul %6, %7, %cst_7 {dimension_numbers = #tpu.dot_dimension_numbers<[1], [0], [0], [1], [0, 0, 1, 1], [], []>} : vector<32x32xf32>, vector<32x32xf32>, vector<32x32xf32> -> vector<32x32xf32>
    %c0_8 = arith.constant 0 : index
    %c0_9 = arith.constant 0 : index
    %9 = vector.load %arg6[%c0_8, %c0_9] : memref<1x32xf32, #tpu.memory_space<vmem>>, vector<1x32xf32>
    %10 = vector.broadcast %9 : vector<1x32xf32> to vector<32x32xf32>
    %11 = arith.addf %8, %10 : vector<32x32xf32>
    %c0_10 = arith.constant 0 : index
    %c0_11 = arith.constant 0 : index
    %12 = vector.load %arg4[%c0_10, %c0_11] : memref<32x32xf32, #tpu.memory_space<vmem>>, vector<32x32xf32>
    %cst_12 = arith.constant dense<0.000000e+00> : vector<32x32xf32>
    %13 = tpu.matmul %6, %12, %cst_12 {dimension_numbers = #tpu.dot_dimension_numbers<[1], [0], [0], [1], [0, 0, 1, 1], [], []>} : vector<32x32xf32>, vector<32x32xf32>, vector<32x32xf32> -> vector<32x32xf32>
    %c0_13 = arith.constant 0 : index
    %c0_14 = arith.constant 0 : index
    %14 = vector.load %arg7[%c0_13, %c0_14] : memref<1x32xf32, #tpu.memory_space<vmem>>, vector<1x32xf32>
    %15 = vector.broadcast %14 : vector<1x32xf32> to vector<32x32xf32>
    %16 = arith.addf %13, %15 : vector<32x32xf32>
    %c0_15 = arith.constant 0 : index
    %c0_16 = arith.constant 0 : index
    %17 = vector.load %arg5[%c0_15, %c0_16] : memref<32x32xf32, #tpu.memory_space<vmem>>, vector<32x32xf32>
    %cst_17 = arith.constant dense<0.000000e+00> : vector<32x32xf32>
    %18 = tpu.matmul %6, %17, %cst_17 {dimension_numbers = #tpu.dot_dimension_numbers<[1], [0], [0], [1], [0, 0, 1, 1], [], []>} : vector<32x32xf32>, vector<32x32xf32>, vector<32x32xf32> -> vector<32x32xf32>
    %c0_18 = arith.constant 0 : index
    %c0_19 = arith.constant 0 : index
    %19 = vector.load %arg8[%c0_18, %c0_19] : memref<1x32xf32, #tpu.memory_space<vmem>>, vector<1x32xf32>
    %20 = vector.broadcast %19 : vector<1x32xf32> to vector<32x32xf32>
    %21 = arith.addf %18, %20 : vector<32x32xf32>
    %c0_20 = arith.constant 0 : index
    %c0_21 = arith.constant 0 : index
    %22 = vector.load %arg9[%c0_20, %c0_21] : memref<32x32xf32, #tpu.memory_space<vmem>>, vector<32x32xf32>
    %c0_22 = arith.constant 0 : index
    %c0_23 = arith.constant 0 : index
    %23 = vector.load %arg10[%c0_22, %c0_23] : memref<32x32xf32, #tpu.memory_space<vmem>>, vector<32x32xf32>
    %c0_24 = arith.constant 0 : index
    %c0_25 = arith.constant 0 : index
    %24 = vector.load %arg11[%c0_24, %c0_25] : memref<32x32xf32, #tpu.memory_space<vmem>>, vector<32x32xf32>
    %c0_26 = arith.constant 0 : index
    %c0_27 = arith.constant 0 : index
    %25 = vector.load %arg12[%c0_26, %c0_27] : memref<1x32xf32, #tpu.memory_space<vmem>>, vector<1x32xf32>
    %cst_28 = arith.constant 0.000000e+00 : f32
    %26 = vector.broadcast %cst_28 : f32 to vector<4x32xf32>
    %27 = vector.extract_strided_slice %11 {offsets = [0, 0], sizes = [4, 32], strides = [1, 1]} : vector<32x32xf32> to vector<4x32xf32>
    %cst_29 = arith.constant dense<0.000000e+00> : vector<4x32xf32>
    %28 = tpu.matmul %26, %22, %cst_29 {dimension_numbers = #tpu.dot_dimension_numbers<[1], [0], [0], [1], [0, 0, 1, 1], [], []>} : vector<4x32xf32>, vector<32x32xf32>, vector<4x32xf32> -> vector<4x32xf32>
    %29 = arith.addf %27, %28 : vector<4x32xf32>
    %30 = arith.negf %29 : vector<4x32xf32>
    %31 = math.exp %30 : vector<4x32xf32>
    %cst_30 = arith.constant 1.000000e+00 : f32
    %32 = vector.broadcast %cst_30 : f32 to vector<4x32xf32>
    %33 = arith.addf %32, %31 : vector<4x32xf32>
    %34 = arith.divf %32, %33 : vector<4x32xf32>
    %35 = vector.extract_strided_slice %16 {offsets = [0, 0], sizes = [4, 32], strides = [1, 1]} : vector<32x32xf32> to vector<4x32xf32>
    %cst_31 = arith.constant dense<0.000000e+00> : vector<4x32xf32>
    %36 = tpu.matmul %26, %23, %cst_31 {dimension_numbers = #tpu.dot_dimension_numbers<[1], [0], [0], [1], [0, 0, 1, 1], [], []>} : vector<4x32xf32>, vector<32x32xf32>, vector<4x32xf32> -> vector<4x32xf32>
    %37 = arith.addf %35, %36 : vector<4x32xf32>
    %38 = arith.negf %37 : vector<4x32xf32>
    %39 = math.exp %38 : vector<4x32xf32>
    %cst_32 = arith.constant 1.000000e+00 : f32
    %40 = vector.broadcast %cst_32 : f32 to vector<4x32xf32>
    %41 = arith.addf %40, %39 : vector<4x32xf32>
    %42 = arith.divf %40, %41 : vector<4x32xf32>
    %43 = vector.extract_strided_slice %21 {offsets = [0, 0], sizes = [4, 32], strides = [1, 1]} : vector<32x32xf32> to vector<4x32xf32>
    %cst_33 = arith.constant dense<0.000000e+00> : vector<4x32xf32>
    %44 = tpu.matmul %26, %24, %cst_33 {dimension_numbers = #tpu.dot_dimension_numbers<[1], [0], [0], [1], [0, 0, 1, 1], [], []>} : vector<4x32xf32>, vector<32x32xf32>, vector<4x32xf32> -> vector<4x32xf32>
    %45 = vector.broadcast %25 : vector<1x32xf32> to vector<4x32xf32>
    %46 = arith.addf %44, %45 : vector<4x32xf32>
    %47 = arith.mulf %34, %46 : vector<4x32xf32>
    %48 = arith.addf %43, %47 : vector<4x32xf32>
    %49 = math.tanh %48 : vector<4x32xf32>
    %cst_34 = arith.constant 1.000000e+00 : f32
    %50 = vector.broadcast %cst_34 : f32 to vector<4x32xf32>
    %51 = arith.subf %50, %42 : vector<4x32xf32>
    %52 = arith.mulf %51, %49 : vector<4x32xf32>
    %53 = arith.mulf %42, %26 : vector<4x32xf32>
    %54 = arith.addf %52, %53 : vector<4x32xf32>
    %c0_35 = arith.constant 0 : index
    %c0_36 = arith.constant 0 : index
    %55 = vector.load %arg16[%c0_35, %c0_36] : memref<32x32xf32, #tpu.memory_space<vmem>>, vector<4x32xf32>
    tpu.vector_store %arg16[%c0_35, %c0_36], %54 {strides = array<i32>} : memref<32x32xf32, #tpu.memory_space<vmem>>, vector<4x32xf32>,
    %56 = vector.extract_strided_slice %11 {offsets = [4, 0], sizes = [4, 32], strides = [1, 1]} : vector<32x32xf32> to vector<4x32xf32>
    %cst_37 = arith.constant dense<0.000000e+00> : vector<4x32xf32>
    %57 = tpu.matmul %54, %22, %cst_37 {dimension_numbers = #tpu.dot_dimension_numbers<[1], [0], [0], [1], [0, 0, 1, 1], [], []>} : vector<4x32xf32>, vector<32x32xf32>, vector<4x32xf32> -> vector<4x32xf32>
    %58 = arith.addf %56, %57 : vector<4x32xf32>
    %59 = arith.negf %58 : vector<4x32xf32>
    %60 = math.exp %59 : vector<4x32xf32>
    %cst_38 = arith.constant 1.000000e+00 : f32
    %61 = vector.broadcast %cst_38 : f32 to vector<4x32xf32>
    %62 = arith.addf %61, %60 : vector<4x32xf32>
    %63 = arith.divf %61, %62 : vector<4x32xf32>
    %64 = vector.extract_strided_slice %16 {offsets = [4, 0], sizes = [4, 32], strides = [1, 1]} : vector<32x32xf32> to vector<4x32xf32>
    %cst_39 = arith.constant dense<0.000000e+00> : vector<4x32xf32>
    %65 = tpu.matmul %54, %23, %cst_39 {dimension_numbers = #tpu.dot_dimension_numbers<[1], [0], [0], [1], [0, 0, 1, 1], [], []>} : vector<4x32xf32>, vector<32x32xf32>, vector<4x32xf32> -> vector<4x32xf32>
    %66 = arith.addf %64, %65 : vector<4x32xf32>
    %67 = arith.negf %66 : vector<4x32xf32>
    %68 = math.exp %67 : vector<4x32xf32>
    %cst_40 = arith.constant 1.000000e+00 : f32
    %69 = vector.broadcast %cst_40 : f32 to vector<4x32xf32>
    %70 = arith.addf %69, %68 : vector<4x32xf32>
    %71 = arith.divf %69, %70 : vector<4x32xf32>
    %72 = vector.extract_strided_slice %21 {offsets = [4, 0], sizes = [4, 32], strides = [1, 1]} : vector<32x32xf32> to vector<4x32xf32>
    %cst_41 = arith.constant dense<0.000000e+00> : vector<4x32xf32>
    %73 = tpu.matmul %54, %24, %cst_41 {dimension_numbers = #tpu.dot_dimension_numbers<[1], [0], [0], [1], [0, 0, 1, 1], [], []>} : vector<4x32xf32>, vector<32x32xf32>, vector<4x32xf32> -> vector<4x32xf32>
    %74 = vector.broadcast %25 : vector<1x32xf32> to vector<4x32xf32>
    %75 = arith.addf %73, %74 : vector<4x32xf32>
    %76 = arith.mulf %63, %75 : vector<4x32xf32>
    %77 = arith.addf %72, %76 : vector<4x32xf32>
    %78 = math.tanh %77 : vector<4x32xf32>
    %cst_42 = arith.constant 1.000000e+00 : f32
    %79 = vector.broadcast %cst_42 : f32 to vector<4x32xf32>
    %80 = arith.subf %79, %71 : vector<4x32xf32>
    %81 = arith.mulf %80, %78 : vector<4x32xf32>
    %82 = arith.mulf %71, %54 : vector<4x32xf32>
    %83 = arith.addf %81, %82 : vector<4x32xf32>
    %c4 = arith.constant 4 : index
    %c0_43 = arith.constant 0 : index
    %84 = vector.load %arg16[%c4, %c0_43] : memref<32x32xf32, #tpu.memory_space<vmem>>, vector<4x32xf32>
    tpu.vector_store %arg16[%c4, %c0_43], %83 {strides = array<i32>} : memref<32x32xf32, #tpu.memory_space<vmem>>, vector<4x32xf32>,
    %85 = vector.extract_strided_slice %11 {offsets = [8, 0], sizes = [4, 32], strides = [1, 1]} : vector<32x32xf32> to vector<4x32xf32>
    %cst_44 = arith.constant dense<0.000000e+00> : vector<4x32xf32>
    %86 = tpu.matmul %83, %22, %cst_44 {dimension_numbers = #tpu.dot_dimension_numbers<[1], [0], [0], [1], [0, 0, 1, 1], [], []>} : vector<4x32xf32>, vector<32x32xf32>, vector<4x32xf32> -> vector<4x32xf32>
    %87 = arith.addf %85, %86 : vector<4x32xf32>
    %88 = arith.negf %87 : vector<4x32xf32>
    %89 = math.exp %88 : vector<4x32xf32>
    %cst_45 = arith.constant 1.000000e+00 : f32
    %90 = vector.broadcast %cst_45 : f32 to vector<4x32xf32>
    %91 = arith.addf %90, %89 : vector<4x32xf32>
    %92 = arith.divf %90, %91 : vector<4x32xf32>
    %93 = vector.extract_strided_slice %16 {offsets = [8, 0], sizes = [4, 32], strides = [1, 1]} : vector<32x32xf32> to vector<4x32xf32>
    %cst_46 = arith.constant dense<0.000000e+00> : vector<4x32xf32>
    %94 = tpu.matmul %83, %23, %cst_46 {dimension_numbers = #tpu.dot_dimension_numbers<[1], [0], [0], [1], [0, 0, 1, 1], [], []>} : vector<4x32xf32>, vector<32x32xf32>, vector<4x32xf32> -> vector<4x32xf32>
    %95 = arith.addf %93, %94 : vector<4x32xf32>
    %96 = arith.negf %95 : vector<4x32xf32>
    %97 = math.exp %96 : vector<4x32xf32>
    %cst_47 = arith.constant 1.000000e+00 : f32
    %98 = vector.broadcast %cst_47 : f32 to vector<4x32xf32>
    %99 = arith.addf %98, %97 : vector<4x32xf32>
    %100 = arith.divf %98, %99 : vector<4x32xf32>
    %101 = vector.extract_strided_slice %21 {offsets = [8, 0], sizes = [4, 32], strides = [1, 1]} : vector<32x32xf32> to vector<4x32xf32>
    %cst_48 = arith.constant dense<0.000000e+00> : vector<4x32xf32>
    %102 = tpu.matmul %83, %24, %cst_48 {dimension_numbers = #tpu.dot_dimension_numbers<[1], [0], [0], [1], [0, 0, 1, 1], [], []>} : vector<4x32xf32>, vector<32x32xf32>, vector<4x32xf32> -> vector<4x32xf32>
    %103 = vector.broadcast %25 : vector<1x32xf32> to vector<4x32xf32>
    %104 = arith.addf %102, %103 : vector<4x32xf32>
    %105 = arith.mulf %92, %104 : vector<4x32xf32>
    %106 = arith.addf %101, %105 : vector<4x32xf32>
    %107 = math.tanh %106 : vector<4x32xf32>
    %cst_49 = arith.constant 1.000000e+00 : f32
    %108 = vector.broadcast %cst_49 : f32 to vector<4x32xf32>
    %109 = arith.subf %108, %100 : vector<4x32xf32>
    %110 = arith.mulf %109, %107 : vector<4x32xf32>
    %111 = arith.mulf %100, %83 : vector<4x32xf32>
    %112 = arith.addf %110, %111 : vector<4x32xf32>
    %c8 = arith.constant 8 : index
    %c0_50 = arith.constant 0 : index
    %113 = vector.load %arg16[%c8, %c0_50] : memref<32x32xf32, #tpu.memory_space<vmem>>, vector<4x32xf32>
    tpu.vector_store %arg16[%c8, %c0_50], %112 {strides = array<i32>} : memref<32x32xf32, #tpu.memory_space<vmem>>, vector<4x32xf32>,
    %114 = vector.extract_strided_slice %11 {offsets = [12, 0], sizes = [4, 32], strides = [1, 1]} : vector<32x32xf32> to vector<4x32xf32>
    %cst_51 = arith.constant dense<0.000000e+00> : vector<4x32xf32>
    %115 = tpu.matmul %112, %22, %cst_51 {dimension_numbers = #tpu.dot_dimension_numbers<[1], [0], [0], [1], [0, 0, 1, 1], [], []>} : vector<4x32xf32>, vector<32x32xf32>, vector<4x32xf32> -> vector<4x32xf32>
    %116 = arith.addf %114, %115 : vector<4x32xf32>
    %117 = arith.negf %116 : vector<4x32xf32>
    %118 = math.exp %117 : vector<4x32xf32>
    %cst_52 = arith.constant 1.000000e+00 : f32
    %119 = vector.broadcast %cst_52 : f32 to vector<4x32xf32>
    %120 = arith.addf %119, %118 : vector<4x32xf32>
    %121 = arith.divf %119, %120 : vector<4x32xf32>
    %122 = vector.extract_strided_slice %16 {offsets = [12, 0], sizes = [4, 32], strides = [1, 1]} : vector<32x32xf32> to vector<4x32xf32>
    %cst_53 = arith.constant dense<0.000000e+00> : vector<4x32xf32>
    %123 = tpu.matmul %112, %23, %cst_53 {dimension_numbers = #tpu.dot_dimension_numbers<[1], [0], [0], [1], [0, 0, 1, 1], [], []>} : vector<4x32xf32>, vector<32x32xf32>, vector<4x32xf32> -> vector<4x32xf32>
    %124 = arith.addf %122, %123 : vector<4x32xf32>
    %125 = arith.negf %124 : vector<4x32xf32>
    %126 = math.exp %125 : vector<4x32xf32>
    %cst_54 = arith.constant 1.000000e+00 : f32
    %127 = vector.broadcast %cst_54 : f32 to vector<4x32xf32>
    %128 = arith.addf %127, %126 : vector<4x32xf32>
    %129 = arith.divf %127, %128 : vector<4x32xf32>
    %130 = vector.extract_strided_slice %21 {offsets = [12, 0], sizes = [4, 32], strides = [1, 1]} : vector<32x32xf32> to vector<4x32xf32>
    %cst_55 = arith.constant dense<0.000000e+00> : vector<4x32xf32>
    %131 = tpu.matmul %112, %24, %cst_55 {dimension_numbers = #tpu.dot_dimension_numbers<[1], [0], [0], [1], [0, 0, 1, 1], [], []>} : vector<4x32xf32>, vector<32x32xf32>, vector<4x32xf32> -> vector<4x32xf32>
    %132 = vector.broadcast %25 : vector<1x32xf32> to vector<4x32xf32>
    %133 = arith.addf %131, %132 : vector<4x32xf32>
    %134 = arith.mulf %121, %133 : vector<4x32xf32>
    %135 = arith.addf %130, %134 : vector<4x32xf32>
    %136 = math.tanh %135 : vector<4x32xf32>
    %cst_56 = arith.constant 1.000000e+00 : f32
    %137 = vector.broadcast %cst_56 : f32 to vector<4x32xf32>
    %138 = arith.subf %137, %129 : vector<4x32xf32>
    %139 = arith.mulf %138, %136 : vector<4x32xf32>
    %140 = arith.mulf %129, %112 : vector<4x32xf32>
    %141 = arith.addf %139, %140 : vector<4x32xf32>
    %c12 = arith.constant 12 : index
    %c0_57 = arith.constant 0 : index
    %142 = vector.load %arg16[%c12, %c0_57] : memref<32x32xf32, #tpu.memory_space<vmem>>, vector<4x32xf32>
    tpu.vector_store %arg16[%c12, %c0_57], %141 {strides = array<i32>} : memref<32x32xf32, #tpu.memory_space<vmem>>, vector<4x32xf32>,
    %143 = vector.extract_strided_slice %11 {offsets = [16, 0], sizes = [4, 32], strides = [1, 1]} : vector<32x32xf32> to vector<4x32xf32>
    %cst_58 = arith.constant dense<0.000000e+00> : vector<4x32xf32>
    %144 = tpu.matmul %141, %22, %cst_58 {dimension_numbers = #tpu.dot_dimension_numbers<[1], [0], [0], [1], [0, 0, 1, 1], [], []>} : vector<4x32xf32>, vector<32x32xf32>, vector<4x32xf32> -> vector<4x32xf32>
    %145 = arith.addf %143, %144 : vector<4x32xf32>
    %146 = arith.negf %145 : vector<4x32xf32>
    %147 = math.exp %146 : vector<4x32xf32>
    %cst_59 = arith.constant 1.000000e+00 : f32
    %148 = vector.broadcast %cst_59 : f32 to vector<4x32xf32>
    %149 = arith.addf %148, %147 : vector<4x32xf32>
    %150 = arith.divf %148, %149 : vector<4x32xf32>
    %151 = vector.extract_strided_slice %16 {offsets = [16, 0], sizes = [4, 32], strides = [1, 1]} : vector<32x32xf32> to vector<4x32xf32>
    %cst_60 = arith.constant dense<0.000000e+00> : vector<4x32xf32>
    %152 = tpu.matmul %141, %23, %cst_60 {dimension_numbers = #tpu.dot_dimension_numbers<[1], [0], [0], [1], [0, 0, 1, 1], [], []>} : vector<4x32xf32>, vector<32x32xf32>, vector<4x32xf32> -> vector<4x32xf32>
    %153 = arith.addf %151, %152 : vector<4x32xf32>
    %154 = arith.negf %153 : vector<4x32xf32>
    %155 = math.exp %154 : vector<4x32xf32>
    %cst_61 = arith.constant 1.000000e+00 : f32
    %156 = vector.broadcast %cst_61 : f32 to vector<4x32xf32>
    %157 = arith.addf %156, %155 : vector<4x32xf32>
    %158 = arith.divf %156, %157 : vector<4x32xf32>
    %159 = vector.extract_strided_slice %21 {offsets = [16, 0], sizes = [4, 32], strides = [1, 1]} : vector<32x32xf32> to vector<4x32xf32>
    %cst_62 = arith.constant dense<0.000000e+00> : vector<4x32xf32>
    %160 = tpu.matmul %141, %24, %cst_62 {dimension_numbers = #tpu.dot_dimension_numbers<[1], [0], [0], [1], [0, 0, 1, 1], [], []>} : vector<4x32xf32>, vector<32x32xf32>, vector<4x32xf32> -> vector<4x32xf32>
    %161 = vector.broadcast %25 : vector<1x32xf32> to vector<4x32xf32>
    %162 = arith.addf %160, %161 : vector<4x32xf32>
    %163 = arith.mulf %150, %162 : vector<4x32xf32>
    %164 = arith.addf %159, %163 : vector<4x32xf32>
    %165 = math.tanh %164 : vector<4x32xf32>
    %cst_63 = arith.constant 1.000000e+00 : f32
    %166 = vector.broadcast %cst_63 : f32 to vector<4x32xf32>
    %167 = arith.subf %166, %158 : vector<4x32xf32>
    %168 = arith.mulf %167, %165 : vector<4x32xf32>
    %169 = arith.mulf %158, %141 : vector<4x32xf32>
    %170 = arith.addf %168, %169 : vector<4x32xf32>
    %c16 = arith.constant 16 : index
    %c0_64 = arith.constant 0 : index
    %171 = vector.load %arg16[%c16, %c0_64] : memref<32x32xf32, #tpu.memory_space<vmem>>, vector<4x32xf32>
    tpu.vector_store %arg16[%c16, %c0_64], %170 {strides = array<i32>} : memref<32x32xf32, #tpu.memory_space<vmem>>, vector<4x32xf32>,
    %172 = vector.extract_strided_slice %11 {offsets = [20, 0], sizes = [4, 32], strides = [1, 1]} : vector<32x32xf32> to vector<4x32xf32>
    %cst_65 = arith.constant dense<0.000000e+00> : vector<4x32xf32>
    %173 = tpu.matmul %170, %22, %cst_65 {dimension_numbers = #tpu.dot_dimension_numbers<[1], [0], [0], [1], [0, 0, 1, 1], [], []>} : vector<4x32xf32>, vector<32x32xf32>, vector<4x32xf32> -> vector<4x32xf32>
    %174 = arith.addf %172, %173 : vector<4x32xf32>
    %175 = arith.negf %174 : vector<4x32xf32>
    %176 = math.exp %175 : vector<4x32xf32>
    %cst_66 = arith.constant 1.000000e+00 : f32
    %177 = vector.broadcast %cst_66 : f32 to vector<4x32xf32>
    %178 = arith.addf %177, %176 : vector<4x32xf32>
    %179 = arith.divf %177, %178 : vector<4x32xf32>
    %180 = vector.extract_strided_slice %16 {offsets = [20, 0], sizes = [4, 32], strides = [1, 1]} : vector<32x32xf32> to vector<4x32xf32>
    %cst_67 = arith.constant dense<0.000000e+00> : vector<4x32xf32>
    %181 = tpu.matmul %170, %23, %cst_67 {dimension_numbers = #tpu.dot_dimension_numbers<[1], [0], [0], [1], [0, 0, 1, 1], [], []>} : vector<4x32xf32>, vector<32x32xf32>, vector<4x32xf32> -> vector<4x32xf32>
    %182 = arith.addf %180, %181 : vector<4x32xf32>
    %183 = arith.negf %182 : vector<4x32xf32>
    %184 = math.exp %183 : vector<4x32xf32>
    %cst_68 = arith.constant 1.000000e+00 : f32
    %185 = vector.broadcast %cst_68 : f32 to vector<4x32xf32>
    %186 = arith.addf %185, %184 : vector<4x32xf32>
    %187 = arith.divf %185, %186 : vector<4x32xf32>
    %188 = vector.extract_strided_slice %21 {offsets = [20, 0], sizes = [4, 32], strides = [1, 1]} : vector<32x32xf32> to vector<4x32xf32>
    %cst_69 = arith.constant dense<0.000000e+00> : vector<4x32xf32>
    %189 = tpu.matmul %170, %24, %cst_69 {dimension_numbers = #tpu.dot_dimension_numbers<[1], [0], [0], [1], [0, 0, 1, 1], [], []>} : vector<4x32xf32>, vector<32x32xf32>, vector<4x32xf32> -> vector<4x32xf32>
    %190 = vector.broadcast %25 : vector<1x32xf32> to vector<4x32xf32>
    %191 = arith.addf %189, %190 : vector<4x32xf32>
    %192 = arith.mulf %179, %191 : vector<4x32xf32>
    %193 = arith.addf %188, %192 : vector<4x32xf32>
    %194 = math.tanh %193 : vector<4x32xf32>
    %cst_70 = arith.constant 1.000000e+00 : f32
    %195 = vector.broadcast %cst_70 : f32 to vector<4x32xf32>
    %196 = arith.subf %195, %187 : vector<4x32xf32>
    %197 = arith.mulf %196, %194 : vector<4x32xf32>
    %198 = arith.mulf %187, %170 : vector<4x32xf32>
    %199 = arith.addf %197, %198 : vector<4x32xf32>
    %c20 = arith.constant 20 : index
    %c0_71 = arith.constant 0 : index
    %200 = vector.load %arg16[%c20, %c0_71] : memref<32x32xf32, #tpu.memory_space<vmem>>, vector<4x32xf32>
    tpu.vector_store %arg16[%c20, %c0_71], %199 {strides = array<i32>} : memref<32x32xf32, #tpu.memory_space<vmem>>, vector<4x32xf32>,
    %201 = vector.extract_strided_slice %11 {offsets = [24, 0], sizes = [4, 32], strides = [1, 1]} : vector<32x32xf32> to vector<4x32xf32>
    %cst_72 = arith.constant dense<0.000000e+00> : vector<4x32xf32>
    %202 = tpu.matmul %199, %22, %cst_72 {dimension_numbers = #tpu.dot_dimension_numbers<[1], [0], [0], [1], [0, 0, 1, 1], [], []>} : vector<4x32xf32>, vector<32x32xf32>, vector<4x32xf32> -> vector<4x32xf32>
    %203 = arith.addf %201, %202 : vector<4x32xf32>
    %204 = arith.negf %203 : vector<4x32xf32>
    %205 = math.exp %204 : vector<4x32xf32>
    %cst_73 = arith.constant 1.000000e+00 : f32
    %206 = vector.broadcast %cst_73 : f32 to vector<4x32xf32>
    %207 = arith.addf %206, %205 : vector<4x32xf32>
    %208 = arith.divf %206, %207 : vector<4x32xf32>
    %209 = vector.extract_strided_slice %16 {offsets = [24, 0], sizes = [4, 32], strides = [1, 1]} : vector<32x32xf32> to vector<4x32xf32>
    %cst_74 = arith.constant dense<0.000000e+00> : vector<4x32xf32>
    %210 = tpu.matmul %199, %23, %cst_74 {dimension_numbers = #tpu.dot_dimension_numbers<[1], [0], [0], [1], [0, 0, 1, 1], [], []>} : vector<4x32xf32>, vector<32x32xf32>, vector<4x32xf32> -> vector<4x32xf32>
    %211 = arith.addf %209, %210 : vector<4x32xf32>
    %212 = arith.negf %211 : vector<4x32xf32>
    %213 = math.exp %212 : vector<4x32xf32>
    %cst_75 = arith.constant 1.000000e+00 : f32
    %214 = vector.broadcast %cst_75 : f32 to vector<4x32xf32>
    %215 = arith.addf %214, %213 : vector<4x32xf32>
    %216 = arith.divf %214, %215 : vector<4x32xf32>
    %217 = vector.extract_strided_slice %21 {offsets = [24, 0], sizes = [4, 32], strides = [1, 1]} : vector<32x32xf32> to vector<4x32xf32>
    %cst_76 = arith.constant dense<0.000000e+00> : vector<4x32xf32>
    %218 = tpu.matmul %199, %24, %cst_76 {dimension_numbers = #tpu.dot_dimension_numbers<[1], [0], [0], [1], [0, 0, 1, 1], [], []>} : vector<4x32xf32>, vector<32x32xf32>, vector<4x32xf32> -> vector<4x32xf32>
    %219 = vector.broadcast %25 : vector<1x32xf32> to vector<4x32xf32>
    %220 = arith.addf %218, %219 : vector<4x32xf32>
    %221 = arith.mulf %208, %220 : vector<4x32xf32>
    %222 = arith.addf %217, %221 : vector<4x32xf32>
    %223 = math.tanh %222 : vector<4x32xf32>
    %cst_77 = arith.constant 1.000000e+00 : f32
    %224 = vector.broadcast %cst_77 : f32 to vector<4x32xf32>
    %225 = arith.subf %224, %216 : vector<4x32xf32>
    %226 = arith.mulf %225, %223 : vector<4x32xf32>
    %227 = arith.mulf %216, %199 : vector<4x32xf32>
    %228 = arith.addf %226, %227 : vector<4x32xf32>
    %c24 = arith.constant 24 : index
    %c0_78 = arith.constant 0 : index
    %229 = vector.load %arg16[%c24, %c0_78] : memref<32x32xf32, #tpu.memory_space<vmem>>, vector<4x32xf32>
    tpu.vector_store %arg16[%c24, %c0_78], %228 {strides = array<i32>} : memref<32x32xf32, #tpu.memory_space<vmem>>, vector<4x32xf32>,
    %230 = vector.extract_strided_slice %11 {offsets = [28, 0], sizes = [4, 32], strides = [1, 1]} : vector<32x32xf32> to vector<4x32xf32>
    %cst_79 = arith.constant dense<0.000000e+00> : vector<4x32xf32>
    %231 = tpu.matmul %228, %22, %cst_79 {dimension_numbers = #tpu.dot_dimension_numbers<[1], [0], [0], [1], [0, 0, 1, 1], [], []>} : vector<4x32xf32>, vector<32x32xf32>, vector<4x32xf32> -> vector<4x32xf32>
    %232 = arith.addf %230, %231 : vector<4x32xf32>
    %233 = arith.negf %232 : vector<4x32xf32>
    %234 = math.exp %233 : vector<4x32xf32>
    %cst_80 = arith.constant 1.000000e+00 : f32
    %235 = vector.broadcast %cst_80 : f32 to vector<4x32xf32>
    %236 = arith.addf %235, %234 : vector<4x32xf32>
    %237 = arith.divf %235, %236 : vector<4x32xf32>
    %238 = vector.extract_strided_slice %16 {offsets = [28, 0], sizes = [4, 32], strides = [1, 1]} : vector<32x32xf32> to vector<4x32xf32>
    %cst_81 = arith.constant dense<0.000000e+00> : vector<4x32xf32>
    %239 = tpu.matmul %228, %23, %cst_81 {dimension_numbers = #tpu.dot_dimension_numbers<[1], [0], [0], [1], [0, 0, 1, 1], [], []>} : vector<4x32xf32>, vector<32x32xf32>, vector<4x32xf32> -> vector<4x32xf32>
    %240 = arith.addf %238, %239 : vector<4x32xf32>
    %241 = arith.negf %240 : vector<4x32xf32>
    %242 = math.exp %241 : vector<4x32xf32>
    %cst_82 = arith.constant 1.000000e+00 : f32
    %243 = vector.broadcast %cst_82 : f32 to vector<4x32xf32>
    %244 = arith.addf %243, %242 : vector<4x32xf32>
    %245 = arith.divf %243, %244 : vector<4x32xf32>
    %246 = vector.extract_strided_slice %21 {offsets = [28, 0], sizes = [4, 32], strides = [1, 1]} : vector<32x32xf32> to vector<4x32xf32>
    %cst_83 = arith.constant dense<0.000000e+00> : vector<4x32xf32>
    %247 = tpu.matmul %228, %24, %cst_83 {dimension_numbers = #tpu.dot_dimension_numbers<[1], [0], [0], [1], [0, 0, 1, 1], [], []>} : vector<4x32xf32>, vector<32x32xf32>, vector<4x32xf32> -> vector<4x32xf32>
    %248 = vector.broadcast %25 : vector<1x32xf32> to vector<4x32xf32>
    %249 = arith.addf %247, %248 : vector<4x32xf32>
    %250 = arith.mulf %237, %249 : vector<4x32xf32>
    %251 = arith.addf %246, %250 : vector<4x32xf32>
    %252 = math.tanh %251 : vector<4x32xf32>
    %cst_84 = arith.constant 1.000000e+00 : f32
    %253 = vector.broadcast %cst_84 : f32 to vector<4x32xf32>
    %254 = arith.subf %253, %245 : vector<4x32xf32>
    %255 = arith.mulf %254, %252 : vector<4x32xf32>
    %256 = arith.mulf %245, %228 : vector<4x32xf32>
    %257 = arith.addf %255, %256 : vector<4x32xf32>
    %c28 = arith.constant 28 : index
    %c0_85 = arith.constant 0 : index
    %258 = vector.load %arg16[%c28, %c0_85] : memref<32x32xf32, #tpu.memory_space<vmem>>, vector<4x32xf32>
    tpu.vector_store %arg16[%c28, %c0_85], %257 {strides = array<i32>} : memref<32x32xf32, #tpu.memory_space<vmem>>, vector<4x32xf32>,
    %c0_86 = arith.constant 0 : index
    %c0_87 = arith.constant 0 : index
    %259 = vector.load %arg16[%c0_86, %c0_87] : memref<32x32xf32, #tpu.memory_space<vmem>>, vector<32x32xf32>
    %c0_88 = arith.constant 0 : index
    %c0_89 = arith.constant 0 : index
    %260 = vector.load %arg13[%c0_88, %c0_89] : memref<32x1xf32, #tpu.memory_space<vmem>>, vector<32x1xf32>
    %cst_90 = arith.constant dense<0.000000e+00> : vector<32x1xf32>
    %261 = tpu.matmul %259, %260, %cst_90 {dimension_numbers = #tpu.dot_dimension_numbers<[1], [0], [0], [1], [0, 0, 1, 1], [], []>} : vector<32x32xf32>, vector<32x1xf32>, vector<32x1xf32> -> vector<32x1xf32>
    %c0_91 = arith.constant 0 : index
    %c0_92 = arith.constant 0 : index
    %262 = vector.load %arg14[%c0_91, %c0_92] : memref<1x1xf32, #tpu.memory_space<vmem>>, vector<1x1xf32>
    %263 = vector.broadcast %262 : vector<1x1xf32> to vector<32x1xf32>
    %264 = arith.addf %261, %263 : vector<32x1xf32>
    %c0_93 = arith.constant 0 : index
    %c0_94 = arith.constant 0 : index
    %265 = vector.load %arg15[%c0_93, %c0_94] : memref<32x1xf32, #tpu.memory_space<vmem>>, vector<32x1xf32>
    tpu.vector_store %arg15[%c0_93, %c0_94], %264 {strides = array<i32>} : memref<32x1xf32, #tpu.memory_space<vmem>>, vector<32x1xf32>,
    return
  }
}

</mosaic_0001>

<bundles_post_ra>
// kernel: critic_rnn_forward.1
= control target key start
LH: loop header
LB: loop body
LE: loop exit
PB: predicated region body
PF: predicated region fallthrough
CT: control target
= control target key end

     0   :  { %vm78_vm0 = vcmask 1043456   ;;  %vm65_vm1 = vcmask 97280   ;;  %vm3370_vm2 = vmmov 1   ;;  %v3371_v22 = vmov 0.0|0.0   ;;  %s3844_s1 = inlined_call_operand.vmem [shape: f32[12,32], index: 1, kind: input, shape index: {}]   ;;  %s3845_s0 = inlined_call_operand.vmem [shape: f32[32,12], index: 0, kind: input, shape index: {}]   ;;  %s3846_s4 = inlined_call_operand.vmem [shape: f32[32,32], index: 4, kind: input, shape index: {}]   ;;  %s3847_s3 = inlined_call_operand.vmem [shape: f32[32,32], index: 3, kind: input, shape index: {}]   ;;  %s3848_s5 = inlined_call_operand.vmem [shape: f32[32,32], index: 5, kind: input, shape index: {}]   ;;  %s3849_s2 = inlined_call_operand.vmem [shape: f32[1,32], index: 2, kind: input, shape index: {}]   ;;  %s3850_s9 = inlined_call_operand.vmem [shape: f32[32,32], index: 9, kind: input, shape index: {}]   ;;  %s3851_s10 = inlined_call_operand.vmem [shape: f32[32,32], index: 10, kind: input, shape index: {}]   ;;  %s3852_s11 = inlined_call_operand.vmem [shape: f32[32,32], index: 11, kind: input, shape index: {}]   ;;  %s3853_s6 = inlined_call_operand.vmem [shape: f32[1,32], index: 6, kind: input, shape index: {}]   ;;  %s3854_s7 = inlined_call_operand.vmem [shape: f32[1,32], index: 7, kind: input, shape index: {}]   ;;  %s3855_s8 = inlined_call_operand.vmem [shape: f32[1,32], index: 8, kind: input, shape index: {}]   ;;  %s3856_s12 = inlined_call_operand.vmem [shape: f32[1,32], index: 12, kind: input, shape index: {}]   ;;  %s3857_s13 = inlined_call_operand.vmem [shape: f32[32,1], index: 13, kind: input, shape index: {}]   ;;  %s3858_s14 = inlined_call_operand.<no memory space> [shape: f32[1,1], index: 14, kind: input, shape index: {}]   ;;  %s3859_s15 = inlined_call_operand.vmem [shape: f32[32,1], index: 15, kind: output, shape index: {}]  }
   0x1   :  { %v56_v0 = vld [vmem:[%s3844_s1] sm:$0xff]  ;;  %v57_v1 = vld [vmem:[%s3844_s1 + $0x8] sm:$0xf]  ;;  %vm3097_vm3 = vmpackc.low %vm78_vm0, %vm3370_vm2  ;;  %vm182_vm4 = vcmask 261120   ;;  %vm3372_vm5 = vmmov 0   ;;  %v3373_v50 = vmov 0.0  }
   0x2   :  { %v3096_v2 = vpack.c.bf16 %v57_v1, %v56_v0  ;;  %v52_v3 = vld [vmem:[%s3845_s0] sm:$0xff]  ;;  %v53_v4 = vld [vmem:[%s3845_s0 + $0x8] sm:$0xff]  ;;  %v54_v5 = vld [vmem:[%s3845_s0 + $0x10] sm:$0xff]  ;;  %vm725_vm6 = vcmask 257024   ;;  %vm972_vm7 = vcmask 261124   ;;  %vm2535_vm8 = vcmask 7168  }
   0x3   :  { %2770 = vmatprep.mubr.msk.f32.mxu1 %vm65_vm1, %v52_v3  ;;  %v55_v6 = vld [vmem:[%s3845_s0 + $0x18] sm:$0xff]  ;;  %v280_v7 = vld [vmem:[%s3846_s4] sm:$0xff]  ;;  %v281_v8 = vld [vmem:[%s3846_s4 + $0x8] sm:$0xff] }
   0x4   :  { %3098 = vmatprep.subr.msk.bf16.mxu1 %vm3097_vm3, %v3096_v2  ;;  %v171_v9 = vld [vmem:[%s3847_s3] sm:$0xff]  ;;  %v3110_v10 = vpack.c.bf16 %v281_v8, %v280_v7  ;;  %v172_v11 = vld [vmem:[%s3847_s3 + $0x8] sm:$0xff]  ;;  %v282_v13 = vld [vmem:[%s3846_s4 + $0x10] sm:$0xff] }
   0x5   :  { %3101 = vmatpush3.bf16.msk.msra.mxu1 %vm3097_vm3, %v3096_v2  ;;  %v3102_v12 = vpack.c.bf16 %v172_v11, %v171_v9  ;;  %v283_v14 = vld [vmem:[%s3846_s4 + $0x18] sm:$0xff]  ;;  %v173_v15 = vld [vmem:[%s3847_s3 + $0x10] sm:$0xff]  ;;  %v376_v19 = vld [vmem:[%s3848_s5] sm:$0xff] }
   0x6   :  { %3111 = vmatprep.subr.bf16.mxu0 %v3110_v10  ;;  %v3114_v16 = vpack.c.bf16 %v283_v14, %v282_v13  ;;  %v174_v17 = vld [vmem:[%s3847_s3 + $0x18] sm:$0xff]  ;;  %v377_v20 = vld [vmem:[%s3848_s5 + $0x8] sm:$0xff]  ;;  %v2544_v23 = vld [vmem:[%s3849_s2] ss:$0 sm:$0xff] }
   0x7   :  { %3103 = vmatprep.subr.bf16.mxu1 %v3102_v12  ;;  %3113 = vmatpush3.bf16.msra.mxu0 %v3110_v10  ;;  %v3106_v18 = vpack.c.bf16 %v174_v17, %v173_v15  ;;  %v3118_v21 = vpack.c.bf16 %v377_v20, %v376_v19  ;;  %v472_v32 = vld [vmem:[%s3850_s9] sm:$0xff]  ;;  %v473_v33 = vld [vmem:[%s3850_s9 + $0x8] sm:$0xff]  ;;  %v378_v34 = vld [vmem:[%s3848_s5 + $0x10] sm:$0xff] }
   0x8   :  { %2771 = vmatmul.mubr.msk.f32.vlgmr.msra.gmra.mrb[0].mxu1 %vm65_vm1, %v53_v4  ;;  %3115 = vmatprep.subr.bf16.mxu0 %v3114_v16  ;;  %v379_v35 = vld [vmem:[%s3848_s5 + $0x18] sm:$0xff]  ;;  %v3518_v36 = vpack.c.bf16 %v473_v33, %v472_v32  ;;  %v474_v39 = vld [vmem:[%s3850_s9 + $0x10] sm:$0xff]  ;;  %v476_v44 = vld [vmem:[%s3851_s10] sm:$0xff] }
   0x9   :  { %2773 = vmatprep.mubr.msk.f32.mxu1 %vm65_vm1, %v54_v5  ;;  %3105 = vmatpush3.bf16.msra.mxu1 %v3102_v12  ;;  %v3122_v38 = vpack.c.bf16 %v379_v35, %v378_v34  ;;  %v475_v40 = vld [vmem:[%s3850_s9 + $0x18] sm:$0xff]  ;;  %v477_v45 = vld [vmem:[%s3851_s10 + $0x8] sm:$0xff]  ;;  %v480_v47 = vld [vmem:[%s3852_s11] sm:$0xff] }
   0xa   :  { %3107 = vmatprep.subr.bf16.mxu1 %v3106_v18  ;;  %v3531_v42 = vpack.c.bf16 %v475_v40, %v474_v39  ;;  %v481_v48 = vld [vmem:[%s3852_s11 + $0x8] sm:$0xff]  ;;  %v3551_v49 = vpack.c.bf16 %v477_v45, %v476_v44  ;;  %v478_v51 = vld [vmem:[%s3851_s10 + $0x10] sm:$0xff]  ;;  %v479_v52 = vld [vmem:[%s3851_s10 + $0x18] sm:$0xff] }
   0xb   :  { %3117 = vmatpush3.bf16.msra.mxu0 %v3114_v16  ;;  %v3562_v53 = vpack.c.bf16 %v481_v48, %v480_v47  ;;  %v482_v54 = vld [vmem:[%s3852_s11 + $0x10] sm:$0xff]  ;;  %v483_v55 = vld [vmem:[%s3852_s11 + $0x18] sm:$0xff]  ;;  %v3576_v56 = vpack.c.bf16 %v479_v52, %v478_v51  ;;  %v2550_v58 = vld [vmem:[%s3853_s6] ss:$0 sm:$0xff] }
   0xc   :  { %2774 = vmatmul.mubr.msk.f32.gmra.mrb[2].mxu1 %vm65_vm1, %v55_v6  ;;  %3126 = vmatprep.subr.bf16.mxu0 %v3371_v22  ;;  %v3580_v57 = vpack.c.bf16 %v483_v55, %v482_v54  ;;  %v2555_v59 = vld [vmem:[%s3854_s7] ss:$0 sm:$0xff] }
   0xd   :  { %3109 = vmatpush3.bf16.msra.mxu1 %v3106_v18  ;;  %v2560_v10 = vld [vmem:[%s3855_s8] ss:$0 sm:$0xff] }
   0xe   :  { %3119 = vmatprep.subr.bf16.mxu1 %v3118_v21  ;;  %v3639_v33 = vld [vmem:[%s3856_s12] ss:$0 sm:$0xff] }
  0xdb   :  { %v2772_v24 = vpop.f32.mrb[0].mxu1 }
  0xdc   :  { %v154_v25 = vadd.f32 %v2772_v24, %v2544_v23  ;;  %v148_v26 = vpop.f32.mrb[1].mxu1 }
  0xdd   :  { %v149_v27 = vadd.f32 %v2544_v23, %v148_v26 }
  0xdf   :  { %3282 = vtanh.f32 %v149_v27  ;;  %v2775_v28 = vpop.f32.mrb[2].mxu1 }
  0xe0   :  { %3284 = vtanh.f32 %v154_v25  ;;  %v164_v29 = vadd.f32 %v2775_v28, %v2544_v23  ;;  %v158_v30 = vpop.f32.mrb[3].mxu1 }
  0xe1   :  { %v159_v31 = vadd.f32 %v2544_v23, %v158_v30 }
  0xe3   :  { %3286 = vtanh.f32 %v159_v31 }
  0xe4   :  { %3288 = vtanh.f32 %v164_v29 }
  0xe9   :  { %v3283_v37 = vpop.eup %3282 }
  0xea   :  { %v3285_v41 = vpop.eup %3284  ;;  %2784 = vmatprep.mubr.msk.f32.mxu1 %vm182_vm4, %v3283_v37  ;;  %2798 = vmatprep.mubr.msk.f32.mxu0 %vm182_vm4, %v3283_v37 }
  0xeb   :  { %2785 = vmatmul.mubr.msk.f32.vlgmr.msra.gmra.mrb[4].mxu1 %vm182_vm4, %v3285_v41  ;;  %2799 = vmatmul.mubr.msk.f32.vlgmr.msra.gmra.mrb[0].mxu0 %vm182_vm4, %v3285_v41 }
  0xec   :  { %3128 = vmatpush3.bf16.msra.mxu0 %v3518_v36  ;;  %3121 = vmatpush3.bf16.msra.mxu1 %v3118_v21 }
  0xed   :  { %v3287_v43 = vpop.eup %3286  ;;  %3129 = vmatprep.subr.bf16.mxu0 %v3371_v22  ;;  %3123 = vmatprep.subr.bf16.mxu1 %v3122_v38 }
  0xee   :  { %v3289_v46 = vpop.eup %3288  ;;  %2787 = vmatprep.mubr.msk.f32.mxu1 %vm182_vm4, %v3287_v43  ;;  %2801 = vmatprep.mubr.msk.f32.mxu0 %vm182_vm4, %v3287_v43 }
  0xef   :  { %2788 = vmatmul.mubr.msk.f32.gmra.mrb[6].mxu1 %vm182_vm4, %v3289_v46  ;;  %2802 = vmatmul.mubr.msk.f32.gmra.mrb[2].mxu0 %vm182_vm4, %v3289_v46 }
  0xf0   :  { %3131 = vmatpush3.bf16.msra.mxu0 %v3531_v42  ;;  %3125 = vmatpush3.bf16.msra.mxu1 %v3122_v38 }
  0xf1   :  { %2812 = vmatprep.mubr.msk.f32.mxu1 %vm182_vm4, %v3283_v37  ;;  %2826 = vmatprep.mubr.msk.f32.mxu0 %vm3372_vm5, %v3373_v50 }
  0xf2   :  { %3132 = vmatprep.subr.bf16.mxu1 %v3371_v22  ;;  %3138 = vmatprep.subr.bf16.mxu0 %v3371_v22 }
  0xf3   :  { %2813 = vmatmul.mubr.msk.f32.vlgmr.msra.gmra.mrb[8].mxu1 %vm182_vm4, %v3285_v41  ;;  %2827 = vmatmul.mubr.f32.vlgmr.msra.gmra.mrb[4].mxu0 %v3373_v50 }
  0xf4   :  { %2815 = vmatprep.mubr.msk.f32.mxu1 %vm182_vm4, %v3287_v43  ;;  %3134 = vmatpush3.bf16.msra.mxu1 %v3551_v49 }
  0xf5   :  { %3135 = vmatprep.subr.bf16.mxu1 %v3371_v22  ;;  %3140 = vmatpush3.bf16.msra.mxu0 %v3562_v53 }
  0xf6   :  { %3141 = vmatprep.subr.bf16.mxu0 %v3371_v22  ;;  %2848 = vmatprep.mubr.msk.f32.mxu0 %vm3372_vm5, %v3373_v50 }
  0xf7   :  { %2816 = vmatmul.mubr.msk.f32.gmra.mrb[10].mxu1 %vm182_vm4, %v3289_v46 }
  0xf8   :  { %3137 = vmatpush3.bf16.msra.mxu1 %v3576_v56  ;;  %2837 = vmatprep.mubr.msk.f32.mxu1 %vm3372_vm5, %v3373_v50 }
  0xf9   :  { %3143 = vmatpush3.bf16.msra.mxu0 %v3580_v57  ;;  %3144 = vmatprep.subr.bf16.mxu1 %v3371_v22 }
  0xfa   :  { %3150 = vmatprep.subr.bf16.mxu0 %v3371_v22 }
  0xfb   :  { %2838 = vmatmul.mubr.f32.vlgmr.msra.gmra.mrb[12].mxu1 %v3373_v50 }
  0xfc   :  { %2849 = vmatmul.mubr.f32.vlgmr.msra.gmra.mrb[6].mxu0 %v3373_v50  ;;  %3146 = vmatpush3.bf16.msra.mxu1 %v3518_v36 }
  0xfd   :  { %3152 = vmatpush3.bf16.msra.mxu0 %v3551_v49  ;;  %3147 = vmatprep.subr.bf16.mxu1 %v3371_v22 }
  0xfe   :  { %3153 = vmatprep.subr.bf16.mxu0 %v3371_v22  ;;  %2859 = vmatprep.mubr.msk.f32.mxu1 %vm3372_vm5, %v3373_v50 }
  0xff   :  { %2870 = vmatprep.mubr.msk.f32.mxu0 %vm3372_vm5, %v3373_v50 }
 0x100   :  { %3149 = vmatpush3.bf16.msra.mxu1 %v3531_v42 }
 0x101   :  { %3155 = vmatpush3.bf16.msra.mxu0 %v3576_v56  ;;  %3156 = vmatprep.subr.bf16.mxu1 %v3371_v22 }
 0x102   :  { %3162 = vmatprep.subr.bf16.mxu0 %v3371_v22 }
 0x1be   :  { %v2786_v60 = vpop.f32.mrb[4].mxu1  ;;  %v2800_v61 = vpop.f32.mrb[0].mxu0 }
 0x1bf   :  { %v3612_v62 = vadd.f32 %v2786_v60, %v2550_v58  ;;  %v3614_v63 = vadd.f32 %v2800_v61, %v2555_v59  ;;  %v261_v0 = vpop.f32.mrb[5].mxu1  ;;  %v357_v1 = vpop.f32.mrb[1].mxu0 }
 0x1c0   :  { %v3627_v11 = vadd.f32 %v2550_v58, %v261_v0  ;;  %v358_v24 = vadd.f32 %v2555_v59, %v357_v1 }
 0x1c2   :  { %v2789_v2 = vpop.f32.mrb[6].mxu1  ;;  %v2803_v3 = vpop.f32.mrb[2].mxu0 }
 0x1c3   :  { %v3616_v4 = vadd.f32 %v2789_v2, %v2550_v58  ;;  %v3618_v5 = vadd.f32 %v2803_v3, %v2555_v59  ;;  %v271_v6 = vpop.f32.mrb[7].mxu1  ;;  %v367_v7 = vpop.f32.mrb[3].mxu0 }
 0x1c4   :  { %v3620_v8 = vadd.f32 %v2550_v58, %v271_v6  ;;  %v3622_v9 = vadd.f32 %v2555_v59, %v367_v7 }
 0x1c6   :  { %v2814_v12 = vpop.f32.mrb[8].mxu1  ;;  %v554_v13 = vpop.f32.mrb[4].mxu0 }
 0x1c7   :  { %v3629_v14 = vadd.f32 %v2814_v12, %v2560_v10  ;;  %v558_v15 = vadd.f32 %v554_v13, %v3627_v11  ;;  %v453_v16 = vpop.f32.mrb[9].mxu1  ;;  %v2828_v17 = vpop.f32.mrb[5].mxu0 }
 0x1c8   :  { %v454_v39 = vadd.f32 %v2560_v10, %v453_v16 }
 0x1c9   :  { %v2565_v18 = vmul.f32 -1.442695, %v558_v15 }
 0x1ca   :  { %v2817_v19 = vpop.f32.mrb[10].mxu1 }
 0x1cb   :  { %3290 = vpow2.f32 %v2565_v18  ;;  %v3632_v20 = vadd.f32 %v2817_v19, %v2560_v10  ;;  %v463_v21 = vpop.f32.mrb[11].mxu1 }
 0x1cc   :  { %v3634_v23 = vadd.f32 %v2560_v10, %v463_v21 }
 0x1ce   :  { %v631_v25 = vpop.f32.mrb[12].mxu1 }
 0x1cf   :  { %v635_v26 = vadd.f32 %v631_v25, %v358_v24  ;;  %v2839_v27 = vpop.f32.mrb[13].mxu1  ;;  %v714_v28 = vpop.f32.mrb[6].mxu0 }
 0x1d0   :  { %v2850_v29 = vpop.f32.mrb[7].mxu0  ;;  %v715_v37 = vadd.f32 %v3639_v33, %v714_v28 }
 0x1d1   :  { %v2566_v30 = vmul.f32 -1.442695, %v635_v26 }
 0x1d3   :  { %3292 = vpow2.f32 %v2566_v30 }
 0x1d5   :  { %v3291_v31 = vpop.eup %3290 }
 0x1d6   :  { %v562_v32 = vadd.f32 1.0, %v3291_v31 }
 0x1d8   :  { %3294 = vrcp.f32 %v562_v32 }
 0x1dd   :  { %v3293_v34 = vpop.eup %3292 }
 0x1de   :  { %v639_v35 = vadd.f32 1.0, %v3293_v34 }
 0x1e0   :  { %3296 = vrcp.f32 %v639_v35 }
 0x1e2   :  { %v3295_v38 = vpop.eup %3294 }
 0x1e3   :  { %v718_v40 = vmul.f32 %v3295_v38, %v715_v37 }
 0x1e5   :  { %v719_v41 = vadd.f32 %v718_v40, %v454_v39 }
 0x1e7   :  { %3298 = vtanh.f32 %v719_v41 }
 0x1ea   :  { %v3297_v43 = vpop.eup %3296 }
 0x1eb   :  { %v721_v44 = vsub.f32 1.0, %v3297_v43  ;;  %v723_v47 = vmul.f32 0.0, %v3297_v43 }
 0x1f1   :  { %v3299_v45 = vpop.eup %3298 }
 0x1f2   :  { %v722_v46 = vmul.f32 %v3299_v45, %v721_v44 }
 0x1f4   :  { %v724_v48 = vadd.f32 %v723_v47, %v722_v46 }
 0x1f6   :  { %726 = vst.msk [vmem:[#allocation2] sm:$0xf] %vm725_vm6, %v724_v48  ;;  %2860 = vmatmul.mubr.msk.f32.vlgmr.msra.gmra.mrb[14].mxu1 %vm182_vm4, %v724_v48  ;;  %2871 = vmatmul.mubr.msk.f32.vlgmr.msra.gmra.mrb[8].mxu0 %vm182_vm4, %v724_v48  ;;  %v968_v17 = vrot.slane %v724_v48, 4 }
 0x1f7   :  { %3158 = vmatpush3.bf16.msra.mxu1 %v3562_v53  ;;  %2881 = vmatprep.mubr.msk.f32.mxu1 %vm3372_vm5, %v3373_v50 }
 0x1f8   :  { %3159 = vmatprep.subr.bf16.mxu1 %v3371_v22  ;;  %3164 = vmatpush3.bf16.msra.mxu0 %v3518_v36 }
 0x1f9   :  { %3165 = vmatprep.subr.bf16.mxu0 %v3371_v22  ;;  %2892 = vmatprep.mubr.msk.f32.mxu0 %vm3372_vm5, %v3373_v50 }
 0x1fb   :  { %3161 = vmatpush3.bf16.msra.mxu1 %v3580_v57 }
 0x1fc   :  { %3168 = vmatprep.subr.bf16.mxu1 %v3371_v22  ;;  %3167 = vmatpush3.bf16.msra.mxu0 %v3531_v42 }
 0x1fd   :  { %3174 = vmatprep.subr.bf16.mxu0 %v3371_v22 }
 0x1fe   :  { %2882 = vmatmul.mubr.msk.f32.vlgmr.msra.gmra.mrb[16].mxu1 %vm182_vm4, %v724_v48 }
 0x1ff   :  { %3170 = vmatpush3.bf16.msra.mxu1 %v3551_v49  ;;  %2903 = vmatprep.mubr.msk.f32.mxu1 %vm3372_vm5, %v3373_v50 }
 0x200   :  { %3171 = vmatprep.subr.bf16.mxu1 %v3371_v22 }
 0x203   :  { %3173 = vmatpush3.bf16.msra.mxu1 %v3576_v56 }
 0x204   :  { %3180 = vmatprep.subr.bf16.mxu1 %v3371_v22 }
 0x2c9   :  { %v796_v51 = vpop.f32.mrb[14].mxu1  ;;  %v876_v52 = vpop.f32.mrb[8].mxu0 }
 0x2ca   :  { %v801_v54 = vrot.slane %v796_v51, 4  ;;  %v881_v55 = vrot.slane %v876_v52, 4  ;;  %v2861_v58 = vpop.f32.mrb[15].mxu1  ;;  %v2872_v59 = vpop.f32.mrb[9].mxu0 }
 0x2cc   :  { %v803_v60 = vadd.f32 %v801_v54, %v3627_v11  ;;  %v883_v61 = vadd.f32 %v881_v55, %v358_v24 }
 0x2ce   :  { %v2569_v0 = vmul.f32 -1.442695, %v803_v60  ;;  %v2571_v1 = vmul.f32 -1.442695, %v883_v61 }
 0x2d0   :  { %3300 = vpow2.f32 %v2569_v0 }
 0x2d1   :  { %3302 = vpow2.f32 %v2571_v1  ;;  %v956_v2 = vpop.f32.mrb[16].mxu1 }
 0x2d2   :  { %v2883_v3 = vpop.f32.mrb[17].mxu1  ;;  %v957_v13 = vadd.f32 %v3639_v33, %v956_v2 }
 0x2d4   :  { %v961_v15 = vrot.slane %v957_v13, 4 }
 0x2da   :  { %v3301_v6 = vpop.eup %3300 }
 0x2db   :  { %v3303_v7 = vpop.eup %3302  ;;  %v807_v10 = vadd.f32 1.0, %v3301_v6 }
 0x2dc   :  { %v887_v12 = vadd.f32 1.0, %v3303_v7 }
 0x2dd   :  { %3304 = vrcp.f32 %v807_v10 }
 0x2de   :  { %3306 = vrcp.f32 %v887_v12 }
 0x2e7   :  { %v3305_v16 = vpop.eup %3304 }
 0x2e8   :  { %v3307_v18 = vpop.eup %3306  ;;  %v963_v11 = vmul.f32 %v3305_v16, %v961_v15 }
 0x2e9   :  { %v970_v19 = vmul.f32 %v3307_v18, %v968_v17  ;;  %v966_v24 = vsub.f32 1.0, %v3307_v18 }
 0x2ea   :  { %v964_v21 = vadd.f32 %v963_v11, %v454_v39 }
 0x2ec   :  { %3308 = vtanh.f32 %v964_v21 }
 0x2f6   :  { %v3309_v25 = vpop.eup %3308 }
 0x2f7   :  { %v967_v26 = vmul.f32 %v3309_v25, %v966_v24 }
 0x2f9   :  { %v971_v27 = vadd.f32 %v970_v19, %v967_v26 }
 0x2fb   :  { %973 = vst.msk [vmem:[#allocation2] sm:$0xf0] %vm972_vm7, %v971_v27  ;;  %v975_v28 = vrot.slane %v971_v27, 4 }
 0x2fd   :  { %2893 = vmatmul.mubr.msk.f32.vlgmr.msra.gmra.mrb[10].mxu0 %vm182_vm4, %v975_v28  ;;  %2904 = vmatmul.mubr.msk.f32.vlgmr.msra.gmra.mrb[18].mxu1 %vm182_vm4, %v975_v28 }
 0x2fe   :  { %3176 = vmatpush3.bf16.msra.mxu0 %v3562_v53  ;;  %2914 = vmatprep.mubr.msk.f32.mxu0 %vm3372_vm5, %v3373_v50 }
 0x2ff   :  { %3177 = vmatprep.subr.bf16.mxu0 %v3371_v22  ;;  %3182 = vmatpush3.bf16.msra.mxu1 %v3518_v36 }
 0x300   :  { %3183 = vmatprep.subr.bf16.mxu1 %v3371_v22  ;;  %2925 = vmatprep.mubr.msk.f32.mxu1 %vm3372_vm5, %v3373_v50 }
 0x302   :  { %3179 = vmatpush3.bf16.msra.mxu0 %v3580_v57 }
 0x303   :  { %3186 = vmatprep.subr.bf16.mxu0 %v3371_v22  ;;  %3185 = vmatpush3.bf16.msra.mxu1 %v3531_v42 }
 0x304   :  { %3192 = vmatprep.subr.bf16.mxu1 %v3371_v22 }
 0x305   :  { %2915 = vmatmul.mubr.msk.f32.vlgmr.msra.gmra.mrb[12].mxu0 %vm182_vm4, %v975_v28 }
 0x306   :  { %3188 = vmatpush3.bf16.msra.mxu0 %v3551_v49  ;;  %2936 = vmatprep.mubr.msk.f32.mxu0 %vm3372_vm5, %v3373_v50 }
 0x307   :  { %3189 = vmatprep.subr.bf16.mxu0 %v3371_v22 }
 0x30a   :  { %3191 = vmatpush3.bf16.msra.mxu0 %v3576_v56 }
 0x30b   :  { %3198 = vmatprep.subr.bf16.mxu0 %v3371_v22 }
 0x3d0   :  { %v1044_v29 = vpop.f32.mrb[10].mxu0  ;;  %v1121_v30 = vpop.f32.mrb[18].mxu1 }
 0x3d1   :  { %v1048_v31 = vadd.f32 %v1044_v29, %v3612_v62  ;;  %v2894_v32 = vpop.f32.mrb[11].mxu0  ;;  %v2905_v34 = vpop.f32.mrb[19].mxu1  ;;  %v1125_v37 = vadd.f32 %v1121_v30, %v3614_v63 }
 0x3d3   :  { %v2574_v35 = vmul.f32 -1.442695, %v1048_v31  ;;  %v2576_v38 = vmul.f32 -1.442695, %v1125_v37 }
 0x3d5   :  { %3310 = vpow2.f32 %v2574_v35 }
 0x3d6   :  { %3312 = vpow2.f32 %v2576_v38 }
 0x3d8   :  { %v1198_v39 = vpop.f32.mrb[12].mxu0 }
 0x3d9   :  { %v2916_v40 = vpop.f32.mrb[13].mxu0  ;;  %v1199_v46 = vadd.f32 %v3639_v33, %v1198_v39 }
 0x3df   :  { %v3311_v41 = vpop.eup %3310 }
 0x3e0   :  { %v1052_v43 = vadd.f32 1.0, %v3311_v41  ;;  %v3313_v44 = vpop.eup %3312 }
 0x3e1   :  { %v1129_v45 = vadd.f32 1.0, %v3313_v44 }
 0x3e2   :  { %3314 = vrcp.f32 %v1052_v43 }
 0x3e3   :  { %3316 = vrcp.f32 %v1129_v45 }
 0x3ec   :  { %v3315_v47 = vpop.eup %3314 }
 0x3ed   :  { %v1202_v48 = vmul.f32 %v3315_v47, %v1199_v46  ;;  %v3317_v52 = vpop.eup %3316 }
 0x3ee   :  { %v1205_v54 = vsub.f32 1.0, %v3317_v52  ;;  %v1208_v59 = vmul.f32 %v3317_v52, %v975_v28 }
 0x3ef   :  { %v1203_v51 = vadd.f32 %v1202_v48, %v3629_v14 }
 0x3f1   :  { %3318 = vtanh.f32 %v1203_v51 }
 0x3fb   :  { %v3319_v55 = vpop.eup %3318 }
 0x3fc   :  { %v1206_v58 = vmul.f32 %v3319_v55, %v1205_v54 }
 0x3fe   :  { %v1209_v60 = vadd.f32 %v1208_v59, %v1206_v58 }
 0x400   :  { %1210 = vst.msk [vmem:[#allocation2 + $0x8] sm:$0xf] %vm725_vm6, %v1209_v60  ;;  %2926 = vmatmul.mubr.msk.f32.vlgmr.msra.gmra.mrb[20].mxu1 %vm182_vm4, %v1209_v60  ;;  %2937 = vmatmul.mubr.msk.f32.vlgmr.msra.gmra.mrb[14].mxu0 %vm182_vm4, %v1209_v60  ;;  %v1452_v26 = vrot.slane %v1209_v60, 4 }
 0x401   :  { %3194 = vmatpush3.bf16.msra.mxu1 %v3562_v53  ;;  %2947 = vmatprep.mubr.msk.f32.mxu1 %vm3372_vm5, %v3373_v50 }
 0x402   :  { %3195 = vmatprep.subr.bf16.mxu1 %v3371_v22  ;;  %3200 = vmatpush3.bf16.msra.mxu0 %v3518_v36 }
 0x403   :  { %3201 = vmatprep.subr.bf16.mxu0 %v3371_v22  ;;  %2958 = vmatprep.mubr.msk.f32.mxu0 %vm3372_vm5, %v3373_v50 }
 0x405   :  { %3197 = vmatpush3.bf16.msra.mxu1 %v3580_v57 }
 0x406   :  { %3204 = vmatprep.subr.bf16.mxu1 %v3371_v22  ;;  %3203 = vmatpush3.bf16.msra.mxu0 %v3531_v42 }
 0x407   :  { %3210 = vmatprep.subr.bf16.mxu0 %v3371_v22 }
 0x408   :  { %2948 = vmatmul.mubr.msk.f32.vlgmr.msra.gmra.mrb[22].mxu1 %vm182_vm4, %v1209_v60 }
 0x409   :  { %3206 = vmatpush3.bf16.msra.mxu1 %v3551_v49  ;;  %2969 = vmatprep.mubr.msk.f32.mxu1 %vm3372_vm5, %v3373_v50 }
 0x40a   :  { %3207 = vmatprep.subr.bf16.mxu1 %v3371_v22 }
 0x40d   :  { %3209 = vmatpush3.bf16.msra.mxu1 %v3576_v56 }
 0x40e   :  { %3216 = vmatprep.subr.bf16.mxu1 %v3371_v22 }
 0x4d3   :  { %v1280_v61 = vpop.f32.mrb[20].mxu1  ;;  %v1360_v0 = vpop.f32.mrb[14].mxu0 }
 0x4d4   :  { %v1285_v1 = vrot.slane %v1280_v61, 4  ;;  %v1365_v2 = vrot.slane %v1360_v0, 4  ;;  %v2927_v3 = vpop.f32.mrb[21].mxu1  ;;  %v2938_v6 = vpop.f32.mrb[15].mxu0 }
 0x4d6   :  { %v1287_v7 = vadd.f32 %v1285_v1, %v3612_v62  ;;  %v1367_v10 = vadd.f32 %v1365_v2, %v3614_v63 }
 0x4d8   :  { %v2579_v12 = vmul.f32 -1.442695, %v1287_v7  ;;  %v2581_v13 = vmul.f32 -1.442695, %v1367_v10 }
 0x4da   :  { %3320 = vpow2.f32 %v2579_v12 }
 0x4db   :  { %3322 = vpow2.f32 %v2581_v13  ;;  %v1440_v15 = vpop.f32.mrb[22].mxu1 }
 0x4dc   :  { %v2949_v16 = vpop.f32.mrb[23].mxu1  ;;  %v1441_v21 = vadd.f32 %v3639_v33, %v1440_v15 }
 0x4de   :  { %v1445_v24 = vrot.slane %v1441_v21, 4 }
 0x4e4   :  { %v3321_v17 = vpop.eup %3320 }
 0x4e5   :  { %v3323_v18 = vpop.eup %3322  ;;  %v1291_v11 = vadd.f32 1.0, %v3321_v17 }
 0x4e6   :  { %v1371_v19 = vadd.f32 1.0, %v3323_v18 }
 0x4e7   :  { %3324 = vrcp.f32 %v1291_v11 }
 0x4e8   :  { %3326 = vrcp.f32 %v1371_v19 }
 0x4f1   :  { %v3325_v25 = vpop.eup %3324 }
 0x4f2   :  { %v3327_v62 = vpop.eup %3326  ;;  %v1447_v27 = vmul.f32 %v3325_v25, %v1445_v24 }
 0x4f3   :  { %v1454_v63 = vmul.f32 %v3327_v62, %v1452_v26  ;;  %v1450_v29 = vsub.f32 1.0, %v3327_v62 }
 0x4f4   :  { %v1448_v28 = vadd.f32 %v1447_v27, %v3629_v14 }
 0x4f6   :  { %3328 = vtanh.f32 %v1448_v28 }
 0x500   :  { %v3329_v30 = vpop.eup %3328 }
 0x501   :  { %v1451_v31 = vmul.f32 %v3329_v30, %v1450_v29 }
 0x503   :  { %v1455_v32 = vadd.f32 %v1454_v63, %v1451_v31 }
 0x505   :  { %1456 = vst.msk [vmem:[#allocation2 + $0x8] sm:$0xf0] %vm972_vm7, %v1455_v32  ;;  %v1458_v34 = vrot.slane %v1455_v32, 4 }
 0x507   :  { %2959 = vmatmul.mubr.msk.f32.vlgmr.msra.gmra.mrb[16].mxu0 %vm182_vm4, %v1458_v34  ;;  %2970 = vmatmul.mubr.msk.f32.vlgmr.msra.gmra.mrb[24].mxu1 %vm182_vm4, %v1458_v34 }
 0x508   :  { %3212 = vmatpush3.bf16.msra.mxu0 %v3562_v53  ;;  %2980 = vmatprep.mubr.msk.f32.mxu0 %vm3372_vm5, %v3373_v50 }
 0x509   :  { %3213 = vmatprep.subr.bf16.mxu0 %v3371_v22  ;;  %3218 = vmatpush3.bf16.msra.mxu1 %v3518_v36 }
 0x50a   :  { %3219 = vmatprep.subr.bf16.mxu1 %v3371_v22  ;;  %2991 = vmatprep.mubr.msk.f32.mxu1 %vm3372_vm5, %v3373_v50 }
 0x50c   :  { %3215 = vmatpush3.bf16.msra.mxu0 %v3580_v57 }
 0x50d   :  { %3222 = vmatprep.subr.bf16.mxu0 %v3371_v22  ;;  %3221 = vmatpush3.bf16.msra.mxu1 %v3531_v42 }
 0x50e   :  { %3228 = vmatprep.subr.bf16.mxu1 %v3371_v22 }
 0x50f   :  { %2981 = vmatmul.mubr.msk.f32.vlgmr.msra.gmra.mrb[18].mxu0 %vm182_vm4, %v1458_v34 }
 0x510   :  { %3224 = vmatpush3.bf16.msra.mxu0 %v3551_v49  ;;  %3002 = vmatprep.mubr.msk.f32.mxu0 %vm3372_vm5, %v3373_v50 }
 0x511   :  { %3225 = vmatprep.subr.bf16.mxu0 %v3371_v22 }
 0x514   :  { %3227 = vmatpush3.bf16.msra.mxu0 %v3576_v56 }
 0x515   :  { %3234 = vmatprep.subr.bf16.mxu0 %v3371_v22 }
 0x5da   :  { %v1527_v14 = vpop.f32.mrb[16].mxu0  ;;  %v1604_v35 = vpop.f32.mrb[24].mxu1 }
 0x5db   :  { %v1531_v37 = vadd.f32 %v1527_v14, %v3620_v8  ;;  %v2960_v38 = vpop.f32.mrb[17].mxu0  ;;  %v2971_v39 = vpop.f32.mrb[25].mxu1  ;;  %v1608_v41 = vadd.f32 %v1604_v35, %v3622_v9 }
 0x5dd   :  { %v2584_v40 = vmul.f32 -1.442695, %v1531_v37  ;;  %v2586_v43 = vmul.f32 -1.442695, %v1608_v41 }
 0x5df   :  { %3330 = vpow2.f32 %v2584_v40 }
 0x5e0   :  { %3332 = vpow2.f32 %v2586_v43 }
 0x5e2   :  { %v1681_v44 = vpop.f32.mrb[18].mxu0 }
 0x5e3   :  { %v2982_v45 = vpop.f32.mrb[19].mxu0  ;;  %v1682_v52 = vadd.f32 %v3639_v33, %v1681_v44 }
 0x5e9   :  { %v3331_v46 = vpop.eup %3330 }
 0x5ea   :  { %v1535_v47 = vadd.f32 1.0, %v3331_v46  ;;  %v3333_v48 = vpop.eup %3332 }
 0x5eb   :  { %v1612_v51 = vadd.f32 1.0, %v3333_v48 }
 0x5ec   :  { %3334 = vrcp.f32 %v1535_v47 }
 0x5ed   :  { %3336 = vrcp.f32 %v1612_v51 }
 0x5f6   :  { %v3335_v54 = vpop.eup %3334 }
 0x5f7   :  { %v1685_v55 = vmul.f32 %v3335_v54, %v1682_v52  ;;  %v3337_v59 = vpop.eup %3336 }
 0x5f8   :  { %v1688_v60 = vsub.f32 1.0, %v3337_v59  ;;  %v1691_v1 = vmul.f32 %v3337_v59, %v1458_v34 }
 0x5f9   :  { %v1686_v58 = vadd.f32 %v1685_v55, %v3634_v23 }
 0x5fb   :  { %3338 = vtanh.f32 %v1686_v58 }
 0x605   :  { %v3339_v61 = vpop.eup %3338 }
 0x606   :  { %v1689_v0 = vmul.f32 %v3339_v61, %v1688_v60 }
 0x608   :  { %v1692_v2 = vadd.f32 %v1691_v1, %v1689_v0 }
 0x60a   :  { %1693 = vst.msk [vmem:[#allocation2 + $0x10] sm:$0xf] %vm725_vm6, %v1692_v2  ;;  %2992 = vmatmul.mubr.msk.f32.vlgmr.msra.gmra.mrb[26].mxu1 %vm182_vm4, %v1692_v2  ;;  %3003 = vmatmul.mubr.msk.f32.vlgmr.msra.gmra.mrb[20].mxu0 %vm182_vm4, %v1692_v2  ;;  %v1935_v28 = vrot.slane %v1692_v2, 4 }
 0x60b   :  { %3230 = vmatpush3.bf16.msra.mxu1 %v3562_v53  ;;  %3013 = vmatprep.mubr.msk.f32.mxu1 %vm3372_vm5, %v3373_v50 }
 0x60c   :  { %3231 = vmatprep.subr.bf16.mxu1 %v3371_v22  ;;  %3236 = vmatpush3.bf16.msra.mxu0 %v3518_v36 }
 0x60d   :  { %3237 = vmatprep.subr.bf16.mxu0 %v3371_v22  ;;  %3024 = vmatprep.mubr.msk.f32.mxu0 %vm3372_vm5, %v3373_v50 }
 0x60f   :  { %3233 = vmatpush3.bf16.msra.mxu1 %v3580_v57 }
 0x610   :  { %3240 = vmatprep.subr.bf16.mxu1 %v3371_v22  ;;  %3239 = vmatpush3.bf16.msra.mxu0 %v3531_v42 }
 0x611   :  { %3246 = vmatprep.subr.bf16.mxu0 %v3371_v22 }
 0x612   :  { %3014 = vmatmul.mubr.msk.f32.vlgmr.msra.gmra.mrb[28].mxu1 %vm182_vm4, %v1692_v2  ;;  %v2429_v2 = vld [vmem:[%s3857_s13 + $0x10] sm:$0xff] }
 0x613   :  { %3242 = vmatpush3.bf16.msra.mxu1 %v3551_v49  ;;  %3035 = vmatprep.mubr.msk.f32.mxu1 %vm3372_vm5, %v3373_v50 }
 0x614   :  { %3243 = vmatprep.subr.bf16.mxu1 %v3371_v22 }
 0x617   :  { %3245 = vmatpush3.bf16.msra.mxu1 %v3576_v56 }
 0x618   :  { %3252 = vmatprep.subr.bf16.mxu1 %v3371_v22 }
 0x6dd   :  { %v1763_v3 = vpop.f32.mrb[26].mxu1  ;;  %v1843_v6 = vpop.f32.mrb[20].mxu0 }
 0x6de   :  { %v1768_v7 = vrot.slane %v1763_v3, 4  ;;  %v1848_v10 = vrot.slane %v1843_v6, 4  ;;  %v2993_v12 = vpop.f32.mrb[27].mxu1  ;;  %v3004_v13 = vpop.f32.mrb[21].mxu0  ;;  %v2430_v3 = vld [vmem:[%s3857_s13 + $0x18] sm:$0xff] }
 0x6df   :  { %v2424_v12 = vld [vmem:[#allocation2 + $0x8] sm:$0xff] }
 0x6e0   :  { %v1770_v15 = vadd.f32 %v1768_v7, %v3620_v8  ;;  %v1850_v16 = vadd.f32 %v1848_v10, %v3622_v9  ;;  %v3274_v7 = vpack.c.bf16 %v2430_v3, %v2429_v2  ;;  %v2423_v10 = vld [vmem:[#allocation2] sm:$0xff] }
 0x6e2   :  { %v2589_v17 = vmul.f32 -1.442695, %v1770_v15  ;;  %v2591_v18 = vmul.f32 -1.442695, %v1850_v16 }
 0x6e4   :  { %3340 = vpow2.f32 %v2589_v17 }
 0x6e5   :  { %3342 = vpow2.f32 %v2591_v18  ;;  %v1923_v11 = vpop.f32.mrb[28].mxu1 }
 0x6e6   :  { %v3015_v19 = vpop.f32.mrb[29].mxu1  ;;  %v1924_v62 = vadd.f32 %v3639_v33, %v1923_v11 }
 0x6e8   :  { %v1928_v27 = vrot.slane %v1924_v62, 4 }
 0x6ee   :  { %v3341_v21 = vpop.eup %3340 }
 0x6ef   :  { %v3343_v24 = vpop.eup %3342  ;;  %v1774_v25 = vadd.f32 1.0, %v3341_v21 }
 0x6f0   :  { %v1854_v26 = vadd.f32 1.0, %v3343_v24 }
 0x6f1   :  { %3344 = vrcp.f32 %v1774_v25 }
 0x6f2   :  { %3346 = vrcp.f32 %v1854_v26 }
 0x6fb   :  { %v3345_v63 = vpop.eup %3344 }
 0x6fc   :  { %v3347_v8 = vpop.eup %3346  ;;  %v1930_v29 = vmul.f32 %v3345_v63, %v1928_v27 }
 0x6fd   :  { %v1937_v9 = vmul.f32 %v3347_v8, %v1935_v28  ;;  %v1933_v31 = vsub.f32 1.0, %v3347_v8 }
 0x6fe   :  { %v1931_v30 = vadd.f32 %v1930_v29, %v3634_v23 }
 0x700   :  { %3348 = vtanh.f32 %v1931_v30 }
 0x70a   :  { %v3349_v32 = vpop.eup %3348 }
 0x70b   :  { %v1934_v34 = vmul.f32 %v3349_v32, %v1933_v31 }
 0x70d   :  { %v1938_v14 = vadd.f32 %v1937_v9, %v1934_v34 }
 0x70f   :  { %1939 = vst.msk [vmem:[#allocation2 + $0x10] sm:$0xf0] %vm972_vm7, %v1938_v14  ;;  %v1941_v35 = vrot.slane %v1938_v14, 4 }
 0x711   :  { %3025 = vmatmul.mubr.msk.f32.vlgmr.msra.gmra.mrb[22].mxu0 %vm182_vm4, %v1941_v35  ;;  %3036 = vmatmul.mubr.msk.f32.vlgmr.msra.gmra.mrb[30].mxu1 %vm182_vm4, %v1941_v35 }
 0x712   :  { %3248 = vmatpush3.bf16.msra.mxu0 %v3562_v53  ;;  %3046 = vmatprep.mubr.msk.f32.mxu0 %vm3372_vm5, %v3373_v50 }
 0x713   :  { %3249 = vmatprep.subr.bf16.mxu0 %v3371_v22  ;;  %3254 = vmatpush3.bf16.msra.mxu1 %v3518_v36  ;;  %v2427_v36 = vld [vmem:[%s3857_s13] sm:$0xff] }
 0x714   :  { %3255 = vmatprep.subr.bf16.mxu1 %v3371_v22  ;;  %3057 = vmatprep.mubr.msk.f32.mxu1 %vm3372_vm5, %v3373_v50 }
 0x716   :  { %3251 = vmatpush3.bf16.msra.mxu0 %v3580_v57  ;;  %v2425_v13 = vld [vmem:[#allocation2 + $0x10] sm:$0xff] }
 0x717   :  { %3258 = vmatprep.subr.bf16.mxu0 %v3371_v22  ;;  %3257 = vmatpush3.bf16.msra.mxu1 %v3531_v42  ;;  %v2428_v42 = vld [vmem:[%s3857_s13 + $0x8] sm:$0xff] }
 0x718   :  { %3264 = vmatprep.subr.bf16.mxu1 %v3371_v22  ;;  %v3270_v23 = vpack.c.bf16 %v2428_v42, %v2427_v36 }
 0x719   :  { %3047 = vmatmul.mubr.msk.f32.vlgmr.msra.gmra.mrb[24].mxu0 %vm182_vm4, %v1941_v35 }
 0x71a   :  { %3260 = vmatpush3.bf16.msra.mxu0 %v3551_v49  ;;  %3068 = vmatprep.mubr.msk.f32.mxu0 %vm3372_vm5, %v3373_v50 }
 0x71b   :  { %3261 = vmatprep.subr.bf16.mxu0 %v3371_v22 }
 0x71e   :  { %3263 = vmatpush3.bf16.msra.mxu0 %v3576_v56 }
 0x71f   :  { %3271 = vmatprep.subr.bf16.mxu0 %v3270_v23 }
 0x7e4   :  { %v2010_v37 = vpop.f32.mrb[22].mxu0  ;;  %v2087_v38 = vpop.f32.mrb[30].mxu1 }
 0x7e5   :  { %v2014_v49 = vadd.f32 %v2010_v37, %v3616_v4  ;;  %v3026_v39 = vpop.f32.mrb[23].mxu0  ;;  %v3037_v40 = vpop.f32.mrb[31].mxu1  ;;  %v2091_v43 = vadd.f32 %v2087_v38, %v3618_v5 }
 0x7e7   :  { %v2594_v41 = vmul.f32 -1.442695, %v2014_v49  ;;  %v2596_v56 = vmul.f32 -1.442695, %v2091_v43 }
 0x7e9   :  { %3350 = vpow2.f32 %v2594_v41 }
 0x7ea   :  { %3352 = vpow2.f32 %v2596_v56 }
 0x7ec   :  { %v2164_v44 = vpop.f32.mrb[24].mxu0 }
 0x7ed   :  { %v3048_v45 = vpop.f32.mrb[25].mxu0  ;;  %v2165_v52 = vadd.f32 %v3639_v33, %v2164_v44 }
 0x7f3   :  { %v3351_v46 = vpop.eup %3350 }
 0x7f4   :  { %v2018_v47 = vadd.f32 1.0, %v3351_v46  ;;  %v3353_v48 = vpop.eup %3352 }
 0x7f5   :  { %v2095_v51 = vadd.f32 1.0, %v3353_v48 }
 0x7f6   :  { %3354 = vrcp.f32 %v2018_v47 }
 0x7f7   :  { %3356 = vrcp.f32 %v2095_v51 }
 0x800   :  { %v3355_v54 = vpop.eup %3354 }
 0x801   :  { %v2168_v55 = vmul.f32 %v3355_v54, %v2165_v52  ;;  %v3357_v59 = vpop.eup %3356 }
 0x802   :  { %v2171_v60 = vsub.f32 1.0, %v3357_v59  ;;  %v2174_v1 = vmul.f32 %v3357_v59, %v1941_v35 }
 0x803   :  { %v2169_v58 = vadd.f32 %v2168_v55, %v3632_v20 }
 0x805   :  { %3358 = vtanh.f32 %v2169_v58 }
 0x80f   :  { %v3359_v61 = vpop.eup %3358 }
 0x810   :  { %v2172_v0 = vmul.f32 %v3359_v61, %v2171_v60 }
 0x812   :  { %v2175_v6 = vadd.f32 %v2174_v1, %v2172_v0 }
 0x814   :  { %2176 = vst.msk [vmem:[#allocation2 + $0x18] sm:$0xf] %vm725_vm6, %v2175_v6  ;;  %3058 = vmatmul.mubr.msk.f32.vlgmr.msra.gmra.mrb[32].mxu1 %vm182_vm4, %v2175_v6  ;;  %3069 = vmatmul.mubr.msk.f32.vlgmr.msra.gmra.mrb[26].mxu0 %vm182_vm4, %v2175_v6  ;;  %v2418_v32 = vrot.slane %v2175_v6, 4 }
 0x815   :  { %3266 = vmatpush3.bf16.msra.mxu1 %v3562_v53  ;;  %3273 = vmatpush3.bf16.msra.mxu0 %v3270_v23  ;;  %v20_v53 = vstv %s3858_s14 }
 0x816   :  { %3090 = vmatprep.mubr.msk.f32.mxu0 %vm182_vm4, %v2423_v10  ;;  %3267 = vmatprep.subr.bf16.mxu1 %v3371_v22  ;;  %21 = vst [vmem:[#allocation3] sm:$0x1] %v20_v53 }
 0x817   :  { %3275 = vmatprep.subr.bf16.mxu0 %v3274_v7  ;;  %3079 = vmatprep.mubr.msk.f32.mxu1 %vm3372_vm5, %v3373_v50 }
 0x819   :  { %3269 = vmatpush3.bf16.msra.mxu1 %v3580_v57  ;;  %3277 = vmatpush3.bf16.msra.mxu0 %v3274_v7 }
 0x81c   :  { %3080 = vmatmul.mubr.msk.f32.vlgmr.msra.gmra.mrb[34].mxu1 %vm182_vm4, %v2175_v6  ;;  %3091 = vmatmul.mubr.msk.f32.vlgmr.msra.gmra.mrb[28].mxu0 %vm182_vm4, %v2424_v12 }
 0x81d   :  { %3093 = vmatprep.mubr.msk.f32.mxu0 %vm182_vm4, %v2425_v13  ;;  %v2603_v24 = vld [vmem:[#allocation3] ss:$0 sm:$0xff] }
 0x8e7   :  { %v2246_v22 = vpop.f32.mrb[32].mxu1  ;;  %v2326_v15 = vpop.f32.mrb[26].mxu0 }
 0x8e8   :  { %v2251_v16 = vrot.slane %v2246_v22, 4  ;;  %v2331_v50 = vrot.slane %v2326_v15, 4  ;;  %v3059_v17 = vpop.f32.mrb[33].mxu1  ;;  %v3070_v57 = vpop.f32.mrb[27].mxu0 }
 0x8ea   :  { %v2253_v18 = vadd.f32 %v2251_v16, %v3616_v4  ;;  %v2333_v11 = vadd.f32 %v2331_v50, %v3618_v5 }
 0x8ec   :  { %v2599_v19 = vmul.f32 -1.442695, %v2253_v18  ;;  %v2601_v21 = vmul.f32 -1.442695, %v2333_v11 }
 0x8ee   :  { %3360 = vpow2.f32 %v2599_v19 }
 0x8ef   :  { %3362 = vpow2.f32 %v2601_v21  ;;  %v2406_v25 = vpop.f32.mrb[34].mxu1  ;;  %v3092_v26 = vpop.f32.mrb[28].mxu0 }
 0x8f0   :  { %v2522_v62 = vadd.f32 %v3092_v26, %v2603_v24  ;;  %v3081_v27 = vpop.f32.mrb[35].mxu1  ;;  %v2516_v63 = vpop.f32.mrb[29].mxu0  ;;  %v2407_v9 = vadd.f32 %v3639_v33, %v2406_v25 }
 0x8f1   :  { %v2517_v28 = vadd.f32 %v2603_v24, %v2516_v63 }
 0x8f2   :  { %2537 = vst.msk [vmem:[%s3859_s15 + $0x8] sm:$0xff] %vm2535_vm8, %v2522_v62  ;;  %v2411_v30 = vrot.slane %v2407_v9, 4 }
 0x8f3   :  { %2536 = vst.msk [vmem:[%s3859_s15] sm:$0xff] %vm2535_vm8, %v2517_v28 }
 0x8f8   :  { %v3361_v4 = vpop.eup %3360 }
 0x8f9   :  { %v3363_v5 = vpop.eup %3362  ;;  %v2257_v8 = vadd.f32 1.0, %v3361_v4 }
 0x8fa   :  { %v2337_v29 = vadd.f32 1.0, %v3363_v5 }
 0x8fb   :  { %3364 = vrcp.f32 %v2257_v8 }
 0x8fc   :  { %3366 = vrcp.f32 %v2337_v29 }
 0x905   :  { %v3365_v31 = vpop.eup %3364 }
 0x906   :  { %v3367_v34 = vpop.eup %3366  ;;  %v2413_v14 = vmul.f32 %v3365_v31, %v2411_v30 }
 0x907   :  { %v2420_v35 = vmul.f32 %v3367_v34, %v2418_v32  ;;  %v2416_v42 = vsub.f32 1.0, %v3367_v34 }
 0x908   :  { %v2414_v36 = vadd.f32 %v2413_v14, %v3632_v20 }
 0x90a   :  { %3368 = vtanh.f32 %v2414_v36 }
 0x914   :  { %v3369_v23 = vpop.eup %3368 }
 0x915   :  { %v2417_v37 = vmul.f32 %v3369_v23, %v2416_v42 }
 0x917   :  { %v2421_v38 = vadd.f32 %v2420_v35, %v2417_v37 }
 0x919   :  { %2422 = vst.msk [vmem:[#allocation2 + $0x18] sm:$0xf0] %vm972_vm7, %v2421_v38 }
 0x920   :  { %v2426_v49 = vld [vmem:[#allocation2 + $0x18] sm:$0xff] }
 0x921   :  { %3094 = vmatmul.mubr.msk.f32.gmra.mrb[30].mxu0 %vm182_vm4, %v2426_v49 }
 0x9f4   :  { %v3095_v39 = vpop.f32.mrb[30].mxu0 }
 0x9f5   :  { %v2532_v33 = vadd.f32 %v3095_v39, %v2603_v24  ;;  %v2526_v40 = vpop.f32.mrb[31].mxu0 }
 0x9f6   :  { %v2527_v41 = vadd.f32 %v2603_v24, %v2526_v40 }
 0x9f7   :  { %2539 = vst.msk [vmem:[%s3859_s15 + $0x18] sm:$0xff] %vm2535_vm8, %v2532_v33 }
 0x9f8   :  { %2538 = vst.msk [vmem:[%s3859_s15 + $0x10] sm:$0xff] %vm2535_vm8, %v2527_v41 }

</bundles_post_ra>
